<compile_context>
chip_gen: v7x
topology: tpu7x:2x2x1
jax: 0.10.0
libtpu: 0.0.40
codegen_flags: <defaults>
</compile_context>

<pallas_src>
import functools
import math

import jax
import jax.numpy as jnp
from jax.experimental import pallas as pl
from jax.experimental.pallas import tpu as pltpu

# ----------------------------- model config (small) -----------------------------
VOCAB = 1000
HIDDEN = 128            # bert-base: 768
NUM_LAYERS = 2          # bert-base: 12
NUM_HEADS = 2           # bert-base: 12
HEAD_DIM = HIDDEN // NUM_HEADS
INTERMEDIATE = 4 * HIDDEN
MAX_POS = 64
TYPE_VOCAB = 2
NUM_CLASSES = 4         # cfg.num_classes = key_count (synthetic)
LANE_PAD = 128          # classifier output padded to a full lane width
SEQ = 16                # cfg.max_length = 15, padded to 16 (pad position masked)
BATCH = 2
LN_EPS = 1e-12          # BERT LayerNorm eps


# ----------------------------- fused BERT kernel -----------------------------
def _bert_kernel(
    emb_ref, mask_ref, eg_ref, eb_ref,
    wqkv_ref, bqkv_ref, wo_ref, bo_ref, ln1g_ref, ln1b_ref,
    wi_ref, bi_ref, wf_ref, bf_ref, ln2g_ref, ln2b_ref,
    pw_ref, pb_ref, cw_ref, cb_ref,
    logits_ref, x_sc,
    *, batch, seq, num_heads, head_dim, eps,
):
    """One grid step = one transformer layer, full batch in the block.

    Activations are carried across layers in x_sc (VMEM, (B*S, H) f32). The
    pooler + classifier run as an epilogue on the last layer and write the only
    HBM output: lane-padded logits (B, 128)."""
    H = num_heads * head_dim
    scale = 1.0 / math.sqrt(head_dim)
    l = pl.program_id(0)

    def layernorm(y, g, b):           # f32 math
        mu = jnp.mean(y, axis=-1, keepdims=True)
        var = jnp.mean((y - mu) * (y - mu), axis=-1, keepdims=True)
        return (y - mu) * jax.lax.rsqrt(var + eps) * g + b

    # Layer 0 init: fused embedding LayerNorm (no zeros-residual slab).
    @pl.when(l == 0)
    def _():
        x_sc[...] = layernorm(emb_ref[...], eg_ref[...], eb_ref[...])

    x = x_sc[...]                                  # (B*S, H) f32, VMEM resident
    x_bf = x.astype(jnp.bfloat16)

    # --- fused Q|K|V projection: one (B*S,H)@(H,3H) bf16 matmul, f32 acc ---
    qkv = jnp.dot(x_bf, wqkv_ref[0], preferred_element_type=jnp.float32) + bqkv_ref[0]

    # --- attention: static loop over (batch, head); head merge folded into the
    #     output projection as a per-head (S,Dh)@(Dh,H) sum. Scores use
    #     dot_general contracting last dims (no K^T relayout). ---
    # TODO(synk): at bert-base scale (12 heads) switch the 64-lane per-head slices
    # to lane-aligned head pairs / a head-batched einsum per review.
    wo = wo_ref[0]                                 # (H, H) bf16
    mask = mask_ref[...]                           # (B, S) additive mask, f32
    attn_rows = []
    for b in range(batch):
        r0 = b * seq
        m_b = mask[b:b + 1, :]                     # (1, S)
        acc = bo_ref[0]                            # (1, H) f32, broadcasts
        for h in range(num_heads):
            lo = h * head_dim
            qh = (qkv[r0:r0 + seq, lo:lo + head_dim] * scale).astype(jnp.bfloat16)
            kh = qkv[r0:r0 + seq, H + lo:H + lo + head_dim].astype(jnp.bfloat16)
            vh = qkv[r0:r0 + seq, 2 * H + lo:2 * H + lo + head_dim].astype(jnp.bfloat16)
            s = jax.lax.dot_general(qh, kh, (((1,), (1,)), ((), ())),
                                    preferred_element_type=jnp.float32) + m_b   # (S,S)
            s = s - jnp.max(s, axis=-1, keepdims=True)
            p = jnp.exp(s)
            p = p * pl.reciprocal(jnp.sum(p, axis=-1, keepdims=True), approx=True)
            ctx = jnp.dot(p.astype(jnp.bfloat16), vh,
                          preferred_element_type=jnp.float32)                   # (S,Dh)
            acc = acc + jnp.dot(ctx.astype(jnp.bfloat16), wo[lo:lo + head_dim, :],
                                preferred_element_type=jnp.float32)             # (S,H)
        attn_rows.append(acc)
    attn = jnp.concatenate(attn_rows, axis=0)      # (B*S, H) f32

    # --- residual + LayerNorm 1 ---
    x = layernorm(attn + x, ln1g_ref[0], ln1b_ref[0])

    # --- feed-forward (exact erf GELU, as in HF BERT), bf16 matmuls / f32 acc ---
    inter = jnp.dot(x.astype(jnp.bfloat16), wi_ref[0],
                    preferred_element_type=jnp.float32) + bi_ref[0]
    inter = 0.5 * inter * (1.0 + jax.lax.erf(inter * (1.0 / math.sqrt(2.0))))
    ffn = jnp.dot(inter.astype(jnp.bfloat16), wf_ref[0],
                  preferred_element_type=jnp.float32) + bf_ref[0]

    # --- residual + LayerNorm 2; carry to next layer ---
    x = layernorm(ffn + x, ln2g_ref[0], ln2b_ref[0])
    x_sc[...] = x

    # --- last-layer epilogue: pooler ([CLS] -> Linear -> tanh) + dropout(identity)
    #     + classifier, lane-padded output ---
    @pl.when(l == pl.num_programs(0) - 1)
    def _():
        cls = jnp.concatenate([x[b * seq:b * seq + 1, :] for b in range(batch)],
                              axis=0)                                            # (B, H)
        pooled = jnp.tanh(
            jnp.dot(cls.astype(jnp.bfloat16), pw_ref[...],
                    preferred_element_type=jnp.float32) + pb_ref[...])
        # dropout(0.2): identity in eval mode (deterministic forward)
        logits_ref[...] = (
            jnp.dot(pooled.astype(jnp.bfloat16), cw_ref[...],
                    preferred_element_type=jnp.float32) + cb_ref[...]
        ).astype(logits_ref.dtype)


def bert_forward_fused(emb_flat, add_mask, p):
    """emb_flat: (B*S, H) raw embeddings; add_mask: (B, S) additive mask -> (B, LANE_PAD) logits."""
    BS, H = emb_flat.shape
    B, S = add_mask.shape
    L = p["wqkv"].shape[0]
    I = p["wi"].shape[-1]
    NP = p["cls_w_pad"].shape[-1]

    cmap = lambda l: (0, 0)      # constants / activations: VMEM-resident across layers
    lmap = lambda l: (l, 0, 0)   # per-layer weight blocks, fetched once per layer

    in_specs = [
        pl.BlockSpec((BS, H), cmap),              # emb (flat)
        pl.BlockSpec((B, S), cmap),               # additive attention mask
        pl.BlockSpec((1, H), cmap),               # emb_ln_g
        pl.BlockSpec((1, H), cmap),               # emb_ln_b
        pl.BlockSpec((1, H, 3 * H), lmap),        # wqkv (bf16)
        pl.BlockSpec((1, 1, 3 * H), lmap),        # bqkv
        pl.BlockSpec((1, H, H), lmap),            # wo   (bf16)
        pl.BlockSpec((1, 1, H), lmap),            # bo
        pl.BlockSpec((1, 1, H), lmap),            # ln1_g
        pl.BlockSpec((1, 1, H), lmap),            # ln1_b
        pl.BlockSpec((1, H, I), lmap),            # wi   (bf16)
        pl.BlockSpec((1, 1, I), lmap),            # bi
        pl.BlockSpec((1, I, H), lmap),            # wf   (bf16)
        pl.BlockSpec((1, 1, H), lmap),            # bf
        pl.BlockSpec((1, 1, H), lmap),            # ln2_g
        pl.BlockSpec((1, 1, H), lmap),            # ln2_b
        pl.BlockSpec((H, H), cmap),               # pool_w (bf16)
        pl.BlockSpec((1, H), cmap),               # pool_b
        pl.BlockSpec((H, NP), cmap),              # cls_w_pad (bf16)
        pl.BlockSpec((1, NP), cmap),              # cls_b_pad
    ]

    return pl.pallas_call(
        functools.partial(
            _bert_kernel, batch=B, seq=S,
            num_heads=NUM_HEADS, head_dim=HEAD_DIM, eps=LN_EPS),
        out_shape=jax.ShapeDtypeStruct((B, NP), jnp.float32),
        grid=(L,),
        in_specs=in_specs,
        out_specs=pl.BlockSpec((B, NP), cmap),
        scratch_shapes=[pltpu.VMEM((BS, H), jnp.float32)],   # activation carry
        compiler_params=pltpu.CompilerParams(
            dimension_semantics=("arbitrary",),              # layer axis is a carried reduction
            vmem_limit_bytes=32 * 1024 * 1024),              # explicit scoped limit (v5e default ~16 MiB)
    )(emb_flat, add_mask, p["emb_ln_g"], p["emb_ln_b"],
      p["wqkv"], p["bqkv"], p["wo"], p["bo"], p["ln1_g"], p["ln1_b"],
      p["wi"], p["bi"], p["wf"], p["bf"], p["ln2_g"], p["ln2_b"],
      p["pool_w"], p["pool_b"], p["cls_w_pad"], p["cls_b_pad"])


# ----------------------------- parameters -----------------------------
def init_params(key):
    def normal(k, shape, scale=0.02, dtype=jnp.float32):
        return (scale * jax.random.normal(k, shape, dtype=jnp.float32)).astype(dtype)

    k = jax.random.split(key, 9)
    H, I, L = HIDDEN, INTERMEDIATE, NUM_LAYERS
    bf = jnp.bfloat16

    cls_w = normal(k[8], (H, NUM_CLASSES))
    cls_w_pad = jnp.zeros((H, LANE_PAD), jnp.float32).at[:, :NUM_CLASSES].set(cls_w)

    return {
        # embeddings (gathered in plain JAX, kept f32)
        "word_emb": normal(k[0], (VOCAB, H)),
        "pos_emb": normal(k[1], (MAX_POS, H)),
        "type_emb": normal(k[2], (TYPE_VOCAB, H)),
        "emb_ln_g": jnp.ones((1, H), jnp.float32),
        "emb_ln_b": jnp.zeros((1, H), jnp.float32),
        # stacked per-layer weights (layer-major); matmul weights bf16, biases/LN f32
        "wqkv": normal(k[3], (L, H, 3 * H), dtype=bf),
        "bqkv": jnp.zeros((L, 1, 3 * H), jnp.float32),
        "wo": normal(k[4], (L, H, H), dtype=bf),
        "bo": jnp.zeros((L, 1, H), jnp.float32),
        "ln1_g": jnp.ones((L, 1, H), jnp.float32),
        "ln1_b": jnp.zeros((L, 1, H), jnp.float32),
        "wi": normal(k[5], (L, H, I), dtype=bf),
        "bi": jnp.zeros((L, 1, I), jnp.float32),
        "wf": normal(k[6], (L, I, H), dtype=bf),
        "bf": jnp.zeros((L, 1, H), jnp.float32),
        "ln2_g": jnp.ones((L, 1, H), jnp.float32),
        "ln2_b": jnp.zeros((L, 1, H), jnp.float32),
        # pooler + classifier head (classifier lane-padded to 128)
        "pool_w": normal(k[7], (H, H), dtype=bf),
        "pool_b": jnp.zeros((1, H), jnp.float32),
        "cls_w_pad": cls_w_pad.astype(bf),
        "cls_b_pad": jnp.zeros((1, LANE_PAD), jnp.float32),
    }


# ----------------------------- forward pass -----------------------------
def bert_classifier_forward(params, input_ids, attention_mask):
    B, S = input_ids.shape

    # --- embeddings (gathers kept in plain JAX) ---
    word = params["word_emb"][input_ids]                          # (B,S,H)
    pos = params["pos_emb"][jnp.arange(S)][None, :, :]            # (1,S,H)
    tok = params["type_emb"][jnp.zeros((B, S), dtype=jnp.int32)]  # (B,S,H)
    emb_flat = (word + pos + tok).reshape(B * S, HIDDEN)          # (B*S,H)

    # additive attention mask (B,S); embedding LN is fused into the kernel's l==0 step
    add_mask = (1.0 - attention_mask.astype(jnp.float32)) * (-1e9)

    # --- one fused pallas_call: emb-LN + all layers + pooler + classifier ---
    logits_pad = bert_forward_fused(emb_flat, add_mask, params)   # (B, LANE_PAD)
    return logits_pad[:, :NUM_CLASSES]                            # (B, num_classes)


# ----------------------------- main -----------------------------
if __name__ == "__main__":
    key = jax.random.PRNGKey(0)
    pkey, ikey = jax.random.split(key)
    params = init_params(pkey)

    input_ids = jax.random.randint(ikey, (BATCH, SEQ), 0, VOCAB, dtype=jnp.int32)
    # cfg.max_length = 15: last position is padding -> masked out
    attention_mask = jnp.concatenate(
        [jnp.ones((BATCH, SEQ - 1), jnp.int32), jnp.zeros((BATCH, 1), jnp.int32)], axis=1
    )

    logits = jax.jit(bert_classifier_forward)(params, input_ids, attention_mask)
    logits = jax.block_until_ready(logits)
    assert logits.shape == (BATCH, NUM_CLASSES) and logits.dtype == jnp.float32
    assert bool(jnp.all(jnp.isfinite(logits)))
    print("KERNEL_OK")
</pallas_src>

<mosaic_0001>
module attributes {stable_mosaic.version = 11 : i64} {
  func.func @_bert_kernel(%arg0: i32, %arg1: memref<32x128xf32, #tpu.memory_space<vmem>>, %arg2: memref<2x16xf32, #tpu.memory_space<vmem>>, %arg3: memref<1x128xf32, #tpu.memory_space<vmem>>, %arg4: memref<1x128xf32, #tpu.memory_space<vmem>>, %arg5: memref<1x128x384xbf16, #tpu.memory_space<vmem>>, %arg6: memref<1x1x384xf32, #tpu.memory_space<vmem>>, %arg7: memref<1x128x128xbf16, #tpu.memory_space<vmem>>, %arg8: memref<1x1x128xf32, #tpu.memory_space<vmem>>, %arg9: memref<1x1x128xf32, #tpu.memory_space<vmem>>, %arg10: memref<1x1x128xf32, #tpu.memory_space<vmem>>, %arg11: memref<1x128x512xbf16, #tpu.memory_space<vmem>>, %arg12: memref<1x1x512xf32, #tpu.memory_space<vmem>>, %arg13: memref<1x512x128xbf16, #tpu.memory_space<vmem>>, %arg14: memref<1x1x128xf32, #tpu.memory_space<vmem>>, %arg15: memref<1x1x128xf32, #tpu.memory_space<vmem>>, %arg16: memref<1x1x128xf32, #tpu.memory_space<vmem>>, %arg17: memref<128x128xbf16, #tpu.memory_space<vmem>>, %arg18: memref<1x128xf32, #tpu.memory_space<vmem>>, %arg19: memref<128x128xbf16, #tpu.memory_space<vmem>>, %arg20: memref<1x128xf32, #tpu.memory_space<vmem>>, %arg21: memref<2x128xf32, #tpu.memory_space<vmem>>, %arg22: memref<32x128xf32, #tpu.memory_space<vmem>>) attributes {dimension_semantics = [#tpu.dimension_semantics<arbitrary>], iteration_bounds = array<i64: 2>, scalar_prefetch = 0 : i64, scratch_operands = 1 : i64, tpu.core_type = #tpu.core_type<tc>, window_params = [{pipeline_mode = #tpu.pipeline_mode<synchronous>, transform_indices = @transform_0, window_bounds = array<i64: 32, 128>}, {pipeline_mode = #tpu.pipeline_mode<synchronous>, transform_indices = @transform_1, window_bounds = array<i64: 2, 16>}, {pipeline_mode = #tpu.pipeline_mode<synchronous>, transform_indices = @transform_2, window_bounds = array<i64: 1, 128>}, {pipeline_mode = #tpu.pipeline_mode<synchronous>, transform_indices = @transform_3, window_bounds = array<i64: 1, 128>}, {transform_indices = @transform_4, window_bounds = array<i64: 1, 128, 384>}, {transform_indices = @transform_5, window_bounds = array<i64: 1, 1, 384>}, {transform_indices = @transform_6, window_bounds = array<i64: 1, 128, 128>}, {transform_indices = @transform_7, window_bounds = array<i64: 1, 1, 128>}, {transform_indices = @transform_8, window_bounds = array<i64: 1, 1, 128>}, {transform_indices = @transform_9, window_bounds = array<i64: 1, 1, 128>}, {transform_indices = @transform_10, window_bounds = array<i64: 1, 128, 512>}, {transform_indices = @transform_11, window_bounds = array<i64: 1, 1, 512>}, {transform_indices = @transform_12, window_bounds = array<i64: 1, 512, 128>}, {transform_indices = @transform_13, window_bounds = array<i64: 1, 1, 128>}, {transform_indices = @transform_14, window_bounds = array<i64: 1, 1, 128>}, {transform_indices = @transform_15, window_bounds = array<i64: 1, 1, 128>}, {pipeline_mode = #tpu.pipeline_mode<synchronous>, transform_indices = @transform_16, window_bounds = array<i64: 128, 128>}, {pipeline_mode = #tpu.pipeline_mode<synchronous>, transform_indices = @transform_17, window_bounds = array<i64: 1, 128>}, {pipeline_mode = #tpu.pipeline_mode<synchronous>, transform_indices = @transform_18, window_bounds = array<i64: 128, 128>}, {pipeline_mode = #tpu.pipeline_mode<synchronous>, transform_indices = @transform_19, window_bounds = array<i64: 1, 128>}, {pipeline_mode = #tpu.pipeline_mode<synchronous>, transform_indices = @transform_20, window_bounds = array<i64: 2, 128>}]} {
    %c0_i32 = arith.constant 0 : i32
    %0 = arith.cmpi eq, %arg0, %c0_i32 : i32
    %1 = arith.extui %0 : i1 to i32
    %c0_i32_0 = arith.constant 0 : i32
    %2 = arith.cmpi ne, %1, %c0_i32_0 : i32
    scf.if %2 {
      %c0_85 = arith.constant 0 : index
      %c0_86 = arith.constant 0 : index
      %218 = vector.load %arg1[%c0_85, %c0_86] : memref<32x128xf32, #tpu.memory_space<vmem>>, vector<32x128xf32>
      %c0_87 = arith.constant 0 : index
      %c0_88 = arith.constant 0 : index
      %219 = vector.load %arg3[%c0_87, %c0_88] : memref<1x128xf32, #tpu.memory_space<vmem>>, vector<1x128xf32>
      %c0_89 = arith.constant 0 : index
      %c0_90 = arith.constant 0 : index
      %220 = vector.load %arg4[%c0_89, %c0_90] : memref<1x128xf32, #tpu.memory_space<vmem>>, vector<1x128xf32>
      %cst_91 = arith.constant dense<0.000000e+00> : vector<32xf32>
      %221 = vector.multi_reduction <add>, %218, %cst_91 [1] : vector<32x128xf32> to vector<32xf32>
      %222 = vector.shape_cast %221 : vector<32xf32> to vector<32x1xf32>
      %cst_92 = arith.constant 1.280000e+02 : f32
      %223 = vector.broadcast %cst_92 : f32 to vector<32x1xf32>
      %224 = arith.divf %222, %223 : vector<32x1xf32>
      %225 = vector.broadcast %224 : vector<32x1xf32> to vector<32x128xf32>
      %226 = arith.subf %218, %225 : vector<32x128xf32>
      %227 = vector.broadcast %224 : vector<32x1xf32> to vector<32x128xf32>
      %228 = arith.subf %218, %227 : vector<32x128xf32>
      %229 = arith.mulf %226, %228 : vector<32x128xf32>
      %cst_93 = arith.constant dense<0.000000e+00> : vector<32xf32>
      %230 = vector.multi_reduction <add>, %229, %cst_93 [1] : vector<32x128xf32> to vector<32xf32>
      %231 = vector.shape_cast %230 : vector<32xf32> to vector<32x1xf32>
      %cst_94 = arith.constant 1.280000e+02 : f32
      %232 = vector.broadcast %cst_94 : f32 to vector<32x1xf32>
      %233 = arith.divf %231, %232 : vector<32x1xf32>
      %234 = vector.broadcast %224 : vector<32x1xf32> to vector<32x128xf32>
      %235 = arith.subf %218, %234 : vector<32x128xf32>
      %cst_95 = arith.constant 9.99999996E-13 : f32
      %236 = vector.broadcast %cst_95 : f32 to vector<32x1xf32>
      %237 = arith.addf %233, %236 : vector<32x1xf32>
      %238 = math.rsqrt %237 : vector<32x1xf32>
      %239 = vector.broadcast %238 : vector<32x1xf32> to vector<32x128xf32>
      %240 = arith.mulf %235, %239 : vector<32x128xf32>
      %241 = vector.broadcast %219 : vector<1x128xf32> to vector<32x128xf32>
      %242 = arith.mulf %240, %241 : vector<32x128xf32>
      %243 = vector.broadcast %220 : vector<1x128xf32> to vector<32x128xf32>
      %244 = arith.addf %242, %243 : vector<32x128xf32>
      %c0_96 = arith.constant 0 : index
      %c0_97 = arith.constant 0 : index
      %245 = vector.load %arg22[%c0_96, %c0_97] : memref<32x128xf32, #tpu.memory_space<vmem>>, vector<32x128xf32>
      tpu.vector_store %arg22[%c0_96, %c0_97], %244 {strides = array<i32>} : memref<32x128xf32, #tpu.memory_space<vmem>>, vector<32x128xf32>,
    } else {
    }
    %c0 = arith.constant 0 : index
    %c0_1 = arith.constant 0 : index
    %3 = vector.load %arg22[%c0, %c0_1] : memref<32x128xf32, #tpu.memory_space<vmem>>, vector<32x128xf32>
    %4 = arith.truncf %3 : vector<32x128xf32> to vector<32x128xbf16>
    %c0_2 = arith.constant 0 : index
    %c0_3 = arith.constant 0 : index
    %c0_4 = arith.constant 0 : index
    %5 = vector.load %arg5[%c0_2, %c0_3, %c0_4] : memref<1x128x384xbf16, #tpu.memory_space<vmem>>, vector<1x128x384xbf16>
    %6 = vector.shape_cast %5 : vector<1x128x384xbf16> to vector<128x384xbf16>
    %cst = arith.constant dense<0.000000e+00> : vector<32x384xf32>
    %7 = tpu.matmul %4, %6, %cst {dimension_numbers = #tpu.dot_dimension_numbers<[1], [0], [0], [1], [0, 0, 1, 1], [], []>} : vector<32x128xbf16>, vector<128x384xbf16>, vector<32x384xf32> -> vector<32x384xf32>
    %c0_5 = arith.constant 0 : index
    %c0_6 = arith.constant 0 : index
    %c0_7 = arith.constant 0 : index
    %8 = vector.load %arg6[%c0_5, %c0_6, %c0_7] : memref<1x1x384xf32, #tpu.memory_space<vmem>>, vector<1x1x384xf32>
    %9 = vector.shape_cast %8 : vector<1x1x384xf32> to vector<1x384xf32>
    %10 = vector.broadcast %9 : vector<1x384xf32> to vector<32x384xf32>
    %11 = arith.addf %7, %10 : vector<32x384xf32>
    %c0_8 = arith.constant 0 : index
    %c0_9 = arith.constant 0 : index
    %c0_10 = arith.constant 0 : index
    %12 = vector.load %arg7[%c0_8, %c0_9, %c0_10] : memref<1x128x128xbf16, #tpu.memory_space<vmem>>, vector<1x128x128xbf16>
    %13 = vector.shape_cast %12 : vector<1x128x128xbf16> to vector<128x128xbf16>
    %c0_11 = arith.constant 0 : index
    %c0_12 = arith.constant 0 : index
    %14 = vector.load %arg2[%c0_11, %c0_12] : memref<2x16xf32, #tpu.memory_space<vmem>>, vector<2x16xf32>
    %15 = vector.extract_strided_slice %14 {offsets = [0, 0], sizes = [1, 16], strides = [1, 1]} : vector<2x16xf32> to vector<1x16xf32>
    %c0_13 = arith.constant 0 : index
    %c0_14 = arith.constant 0 : index
    %c0_15 = arith.constant 0 : index
    %16 = vector.load %arg8[%c0_13, %c0_14, %c0_15] : memref<1x1x128xf32, #tpu.memory_space<vmem>>, vector<1x1x128xf32>
    %17 = vector.shape_cast %16 : vector<1x1x128xf32> to vector<1x128xf32>
    %18 = vector.extract_strided_slice %11 {offsets = [0, 0], sizes = [16, 64], strides = [1, 1]} : vector<32x384xf32> to vector<16x64xf32>
    %cst_16 = arith.constant 1.250000e-01 : f32
    %19 = vector.broadcast %cst_16 : f32 to vector<16x64xf32>
    %20 = arith.mulf %18, %19 : vector<16x64xf32>
    %21 = arith.truncf %20 : vector<16x64xf32> to vector<16x64xbf16>
    %22 = vector.extract_strided_slice %11 {offsets = [0, 128], sizes = [16, 64], strides = [1, 1]} : vector<32x384xf32> to vector<16x64xf32>
    %23 = arith.truncf %22 : vector<16x64xf32> to vector<16x64xbf16>
    %24 = vector.extract_strided_slice %11 {offsets = [0, 256], sizes = [16, 64], strides = [1, 1]} : vector<32x384xf32> to vector<16x64xf32>
    %25 = arith.truncf %24 : vector<16x64xf32> to vector<16x64xbf16>
    %cst_17 = arith.constant dense<0.000000e+00> : vector<16x16xf32>
    %26 = tpu.matmul %21, %23, %cst_17 {dimension_numbers = #tpu.dot_dimension_numbers<[1], [1], [0], [0], [0, 0, 1, 0], [], []>} : vector<16x64xbf16>, vector<16x64xbf16>, vector<16x16xf32> -> vector<16x16xf32>
    %27 = vector.broadcast %15 : vector<1x16xf32> to vector<16x16xf32>
    %28 = arith.addf %26, %27 : vector<16x16xf32>
    %cst_18 = arith.constant dense<0xFF800000> : vector<16xf32>
    %29 = vector.multi_reduction <maximumf>, %28, %cst_18 [1] : vector<16x16xf32> to vector<16xf32>
    %30 = vector.shape_cast %29 : vector<16xf32> to vector<16x1xf32>
    %31 = vector.broadcast %30 : vector<16x1xf32> to vector<16x16xf32>
    %32 = arith.subf %28, %31 : vector<16x16xf32>
    %33 = math.exp %32 : vector<16x16xf32>
    %cst_19 = arith.constant dense<0.000000e+00> : vector<16xf32>
    %34 = vector.multi_reduction <add>, %33, %cst_19 [1] : vector<16x16xf32> to vector<16xf32>
    %35 = vector.shape_cast %34 : vector<16xf32> to vector<16x1xf32>
    %36 = tpu.reciprocal %35 {approx = true} : vector<16x1xf32> -> vector<16x1xf32>
    %37 = vector.broadcast %36 : vector<16x1xf32> to vector<16x16xf32>
    %38 = arith.mulf %33, %37 : vector<16x16xf32>
    %39 = arith.truncf %38 : vector<16x16xf32> to vector<16x16xbf16>
    %cst_20 = arith.constant dense<0.000000e+00> : vector<16x64xf32>
    %40 = tpu.matmul %39, %25, %cst_20 {dimension_numbers = #tpu.dot_dimension_numbers<[1], [0], [0], [1], [0, 0, 1, 1], [], []>} : vector<16x16xbf16>, vector<16x64xbf16>, vector<16x64xf32> -> vector<16x64xf32>
    %41 = arith.truncf %40 : vector<16x64xf32> to vector<16x64xbf16>
    %42 = vector.extract_strided_slice %13 {offsets = [0, 0], sizes = [64, 128], strides = [1, 1]} : vector<128x128xbf16> to vector<64x128xbf16>
    %cst_21 = arith.constant dense<0.000000e+00> : vector<16x128xf32>
    %43 = tpu.matmul %41, %42, %cst_21 {dimension_numbers = #tpu.dot_dimension_numbers<[1], [0], [0], [1], [0, 0, 1, 1], [], []>} : vector<16x64xbf16>, vector<64x128xbf16>, vector<16x128xf32> -> vector<16x128xf32>
    %44 = vector.broadcast %17 : vector<1x128xf32> to vector<16x128xf32>
    %45 = arith.addf %44, %43 : vector<16x128xf32>
    %46 = vector.extract_strided_slice %11 {offsets = [0, 64], sizes = [16, 64], strides = [1, 1]} : vector<32x384xf32> to vector<16x64xf32>
    %cst_22 = arith.constant 1.250000e-01 : f32
    %47 = vector.broadcast %cst_22 : f32 to vector<16x64xf32>
    %48 = arith.mulf %46, %47 : vector<16x64xf32>
    %49 = arith.truncf %48 : vector<16x64xf32> to vector<16x64xbf16>
    %50 = vector.extract_strided_slice %11 {offsets = [0, 192], sizes = [16, 64], strides = [1, 1]} : vector<32x384xf32> to vector<16x64xf32>
    %51 = arith.truncf %50 : vector<16x64xf32> to vector<16x64xbf16>
    %52 = vector.extract_strided_slice %11 {offsets = [0, 320], sizes = [16, 64], strides = [1, 1]} : vector<32x384xf32> to vector<16x64xf32>
    %53 = arith.truncf %52 : vector<16x64xf32> to vector<16x64xbf16>
    %cst_23 = arith.constant dense<0.000000e+00> : vector<16x16xf32>
    %54 = tpu.matmul %49, %51, %cst_23 {dimension_numbers = #tpu.dot_dimension_numbers<[1], [1], [0], [0], [0, 0, 1, 0], [], []>} : vector<16x64xbf16>, vector<16x64xbf16>, vector<16x16xf32> -> vector<16x16xf32>
    %55 = vector.broadcast %15 : vector<1x16xf32> to vector<16x16xf32>
    %56 = arith.addf %54, %55 : vector<16x16xf32>
    %cst_24 = arith.constant dense<0xFF800000> : vector<16xf32>
    %57 = vector.multi_reduction <maximumf>, %56, %cst_24 [1] : vector<16x16xf32> to vector<16xf32>
    %58 = vector.shape_cast %57 : vector<16xf32> to vector<16x1xf32>
    %59 = vector.broadcast %58 : vector<16x1xf32> to vector<16x16xf32>
    %60 = arith.subf %56, %59 : vector<16x16xf32>
    %61 = math.exp %60 : vector<16x16xf32>
    %cst_25 = arith.constant dense<0.000000e+00> : vector<16xf32>
    %62 = vector.multi_reduction <add>, %61, %cst_25 [1] : vector<16x16xf32> to vector<16xf32>
    %63 = vector.shape_cast %62 : vector<16xf32> to vector<16x1xf32>
    %64 = tpu.reciprocal %63 {approx = true} : vector<16x1xf32> -> vector<16x1xf32>
    %65 = vector.broadcast %64 : vector<16x1xf32> to vector<16x16xf32>
    %66 = arith.mulf %61, %65 : vector<16x16xf32>
    %67 = arith.truncf %66 : vector<16x16xf32> to vector<16x16xbf16>
    %cst_26 = arith.constant dense<0.000000e+00> : vector<16x64xf32>
    %68 = tpu.matmul %67, %53, %cst_26 {dimension_numbers = #tpu.dot_dimension_numbers<[1], [0], [0], [1], [0, 0, 1, 1], [], []>} : vector<16x16xbf16>, vector<16x64xbf16>, vector<16x64xf32> -> vector<16x64xf32>
    %69 = arith.truncf %68 : vector<16x64xf32> to vector<16x64xbf16>
    %70 = vector.extract_strided_slice %13 {offsets = [64, 0], sizes = [64, 128], strides = [1, 1]} : vector<128x128xbf16> to vector<64x128xbf16>
    %cst_27 = arith.constant dense<0.000000e+00> : vector<16x128xf32>
    %71 = tpu.matmul %69, %70, %cst_27 {dimension_numbers = #tpu.dot_dimension_numbers<[1], [0], [0], [1], [0, 0, 1, 1], [], []>} : vector<16x64xbf16>, vector<64x128xbf16>, vector<16x128xf32> -> vector<16x128xf32>
    %72 = arith.addf %45, %71 : vector<16x128xf32>
    %73 = vector.extract_strided_slice %14 {offsets = [1, 0], sizes = [1, 16], strides = [1, 1]} : vector<2x16xf32> to vector<1x16xf32>
    %c0_28 = arith.constant 0 : index
    %c0_29 = arith.constant 0 : index
    %c0_30 = arith.constant 0 : index
    %74 = vector.load %arg8[%c0_28, %c0_29, %c0_30] : memref<1x1x128xf32, #tpu.memory_space<vmem>>, vector<1x1x128xf32>
    %75 = vector.shape_cast %74 : vector<1x1x128xf32> to vector<1x128xf32>
    %76 = vector.extract_strided_slice %11 {offsets = [16, 0], sizes = [16, 64], strides = [1, 1]} : vector<32x384xf32> to vector<16x64xf32>
    %cst_31 = arith.constant 1.250000e-01 : f32
    %77 = vector.broadcast %cst_31 : f32 to vector<16x64xf32>
    %78 = arith.mulf %76, %77 : vector<16x64xf32>
    %79 = arith.truncf %78 : vector<16x64xf32> to vector<16x64xbf16>
    %80 = vector.extract_strided_slice %11 {offsets = [16, 128], sizes = [16, 64], strides = [1, 1]} : vector<32x384xf32> to vector<16x64xf32>
    %81 = arith.truncf %80 : vector<16x64xf32> to vector<16x64xbf16>
    %82 = vector.extract_strided_slice %11 {offsets = [16, 256], sizes = [16, 64], strides = [1, 1]} : vector<32x384xf32> to vector<16x64xf32>
    %83 = arith.truncf %82 : vector<16x64xf32> to vector<16x64xbf16>
    %cst_32 = arith.constant dense<0.000000e+00> : vector<16x16xf32>
    %84 = tpu.matmul %79, %81, %cst_32 {dimension_numbers = #tpu.dot_dimension_numbers<[1], [1], [0], [0], [0, 0, 1, 0], [], []>} : vector<16x64xbf16>, vector<16x64xbf16>, vector<16x16xf32> -> vector<16x16xf32>
    %85 = vector.broadcast %73 : vector<1x16xf32> to vector<16x16xf32>
    %86 = arith.addf %84, %85 : vector<16x16xf32>
    %cst_33 = arith.constant dense<0xFF800000> : vector<16xf32>
    %87 = vector.multi_reduction <maximumf>, %86, %cst_33 [1] : vector<16x16xf32> to vector<16xf32>
    %88 = vector.shape_cast %87 : vector<16xf32> to vector<16x1xf32>
    %89 = vector.broadcast %88 : vector<16x1xf32> to vector<16x16xf32>
    %90 = arith.subf %86, %89 : vector<16x16xf32>
    %91 = math.exp %90 : vector<16x16xf32>
    %cst_34 = arith.constant dense<0.000000e+00> : vector<16xf32>
    %92 = vector.multi_reduction <add>, %91, %cst_34 [1] : vector<16x16xf32> to vector<16xf32>
    %93 = vector.shape_cast %92 : vector<16xf32> to vector<16x1xf32>
    %94 = tpu.reciprocal %93 {approx = true} : vector<16x1xf32> -> vector<16x1xf32>
    %95 = vector.broadcast %94 : vector<16x1xf32> to vector<16x16xf32>
    %96 = arith.mulf %91, %95 : vector<16x16xf32>
    %97 = arith.truncf %96 : vector<16x16xf32> to vector<16x16xbf16>
    %cst_35 = arith.constant dense<0.000000e+00> : vector<16x64xf32>
    %98 = tpu.matmul %97, %83, %cst_35 {dimension_numbers = #tpu.dot_dimension_numbers<[1], [0], [0], [1], [0, 0, 1, 1], [], []>} : vector<16x16xbf16>, vector<16x64xbf16>, vector<16x64xf32> -> vector<16x64xf32>
    %99 = arith.truncf %98 : vector<16x64xf32> to vector<16x64xbf16>
    %100 = vector.extract_strided_slice %13 {offsets = [0, 0], sizes = [64, 128], strides = [1, 1]} : vector<128x128xbf16> to vector<64x128xbf16>
    %cst_36 = arith.constant dense<0.000000e+00> : vector<16x128xf32>
    %101 = tpu.matmul %99, %100, %cst_36 {dimension_numbers = #tpu.dot_dimension_numbers<[1], [0], [0], [1], [0, 0, 1, 1], [], []>} : vector<16x64xbf16>, vector<64x128xbf16>, vector<16x128xf32> -> vector<16x128xf32>
    %102 = vector.broadcast %75 : vector<1x128xf32> to vector<16x128xf32>
    %103 = arith.addf %102, %101 : vector<16x128xf32>
    %104 = vector.extract_strided_slice %11 {offsets = [16, 64], sizes = [16, 64], strides = [1, 1]} : vector<32x384xf32> to vector<16x64xf32>
    %cst_37 = arith.constant 1.250000e-01 : f32
    %105 = vector.broadcast %cst_37 : f32 to vector<16x64xf32>
    %106 = arith.mulf %104, %105 : vector<16x64xf32>
    %107 = arith.truncf %106 : vector<16x64xf32> to vector<16x64xbf16>
    %108 = vector.extract_strided_slice %11 {offsets = [16, 192], sizes = [16, 64], strides = [1, 1]} : vector<32x384xf32> to vector<16x64xf32>
    %109 = arith.truncf %108 : vector<16x64xf32> to vector<16x64xbf16>
    %110 = vector.extract_strided_slice %11 {offsets = [16, 320], sizes = [16, 64], strides = [1, 1]} : vector<32x384xf32> to vector<16x64xf32>
    %111 = arith.truncf %110 : vector<16x64xf32> to vector<16x64xbf16>
    %cst_38 = arith.constant dense<0.000000e+00> : vector<16x16xf32>
    %112 = tpu.matmul %107, %109, %cst_38 {dimension_numbers = #tpu.dot_dimension_numbers<[1], [1], [0], [0], [0, 0, 1, 0], [], []>} : vector<16x64xbf16>, vector<16x64xbf16>, vector<16x16xf32> -> vector<16x16xf32>
    %113 = vector.broadcast %73 : vector<1x16xf32> to vector<16x16xf32>
    %114 = arith.addf %112, %113 : vector<16x16xf32>
    %cst_39 = arith.constant dense<0xFF800000> : vector<16xf32>
    %115 = vector.multi_reduction <maximumf>, %114, %cst_39 [1] : vector<16x16xf32> to vector<16xf32>
    %116 = vector.shape_cast %115 : vector<16xf32> to vector<16x1xf32>
    %117 = vector.broadcast %116 : vector<16x1xf32> to vector<16x16xf32>
    %118 = arith.subf %114, %117 : vector<16x16xf32>
    %119 = math.exp %118 : vector<16x16xf32>
    %cst_40 = arith.constant dense<0.000000e+00> : vector<16xf32>
    %120 = vector.multi_reduction <add>, %119, %cst_40 [1] : vector<16x16xf32> to vector<16xf32>
    %121 = vector.shape_cast %120 : vector<16xf32> to vector<16x1xf32>
    %122 = tpu.reciprocal %121 {approx = true} : vector<16x1xf32> -> vector<16x1xf32>
    %123 = vector.broadcast %122 : vector<16x1xf32> to vector<16x16xf32>
    %124 = arith.mulf %119, %123 : vector<16x16xf32>
    %125 = arith.truncf %124 : vector<16x16xf32> to vector<16x16xbf16>
    %cst_41 = arith.constant dense<0.000000e+00> : vector<16x64xf32>
    %126 = tpu.matmul %125, %111, %cst_41 {dimension_numbers = #tpu.dot_dimension_numbers<[1], [0], [0], [1], [0, 0, 1, 1], [], []>} : vector<16x16xbf16>, vector<16x64xbf16>, vector<16x64xf32> -> vector<16x64xf32>
    %127 = arith.truncf %126 : vector<16x64xf32> to vector<16x64xbf16>
    %128 = vector.extract_strided_slice %13 {offsets = [64, 0], sizes = [64, 128], strides = [1, 1]} : vector<128x128xbf16> to vector<64x128xbf16>
    %cst_42 = arith.constant dense<0.000000e+00> : vector<16x128xf32>
    %129 = tpu.matmul %127, %128, %cst_42 {dimension_numbers = #tpu.dot_dimension_numbers<[1], [0], [0], [1], [0, 0, 1, 1], [], []>} : vector<16x64xbf16>, vector<64x128xbf16>, vector<16x128xf32> -> vector<16x128xf32>
    %130 = arith.addf %103, %129 : vector<16x128xf32>
    %131 = tpu.concatenate %72, %130 in 0 : vector<16x128xf32>, vector<16x128xf32> -> vector<32x128xf32>
    %132 = arith.addf %131, %3 : vector<32x128xf32>
    %c0_43 = arith.constant 0 : index
    %c0_44 = arith.constant 0 : index
    %c0_45 = arith.constant 0 : index
    %133 = vector.load %arg9[%c0_43, %c0_44, %c0_45] : memref<1x1x128xf32, #tpu.memory_space<vmem>>, vector<1x1x128xf32>
    %134 = vector.shape_cast %133 : vector<1x1x128xf32> to vector<1x128xf32>
    %c0_46 = arith.constant 0 : index
    %c0_47 = arith.constant 0 : index
    %c0_48 = arith.constant 0 : index
    %135 = vector.load %arg10[%c0_46, %c0_47, %c0_48] : memref<1x1x128xf32, #tpu.memory_space<vmem>>, vector<1x1x128xf32>
    %136 = vector.shape_cast %135 : vector<1x1x128xf32> to vector<1x128xf32>
    %cst_49 = arith.constant dense<0.000000e+00> : vector<32xf32>
    %137 = vector.multi_reduction <add>, %132, %cst_49 [1] : vector<32x128xf32> to vector<32xf32>
    %138 = vector.shape_cast %137 : vector<32xf32> to vector<32x1xf32>
    %cst_50 = arith.constant 1.280000e+02 : f32
    %139 = vector.broadcast %cst_50 : f32 to vector<32x1xf32>
    %140 = arith.divf %138, %139 : vector<32x1xf32>
    %141 = vector.broadcast %140 : vector<32x1xf32> to vector<32x128xf32>
    %142 = arith.subf %132, %141 : vector<32x128xf32>
    %143 = vector.broadcast %140 : vector<32x1xf32> to vector<32x128xf32>
    %144 = arith.subf %132, %143 : vector<32x128xf32>
    %145 = arith.mulf %142, %144 : vector<32x128xf32>
    %cst_51 = arith.constant dense<0.000000e+00> : vector<32xf32>
    %146 = vector.multi_reduction <add>, %145, %cst_51 [1] : vector<32x128xf32> to vector<32xf32>
    %147 = vector.shape_cast %146 : vector<32xf32> to vector<32x1xf32>
    %cst_52 = arith.constant 1.280000e+02 : f32
    %148 = vector.broadcast %cst_52 : f32 to vector<32x1xf32>
    %149 = arith.divf %147, %148 : vector<32x1xf32>
    %150 = vector.broadcast %140 : vector<32x1xf32> to vector<32x128xf32>
    %151 = arith.subf %132, %150 : vector<32x128xf32>
    %cst_53 = arith.constant 9.99999996E-13 : f32
    %152 = vector.broadcast %cst_53 : f32 to vector<32x1xf32>
    %153 = arith.addf %149, %152 : vector<32x1xf32>
    %154 = math.rsqrt %153 : vector<32x1xf32>
    %155 = vector.broadcast %154 : vector<32x1xf32> to vector<32x128xf32>
    %156 = arith.mulf %151, %155 : vector<32x128xf32>
    %157 = vector.broadcast %134 : vector<1x128xf32> to vector<32x128xf32>
    %158 = arith.mulf %156, %157 : vector<32x128xf32>
    %159 = vector.broadcast %136 : vector<1x128xf32> to vector<32x128xf32>
    %160 = arith.addf %158, %159 : vector<32x128xf32>
    %161 = arith.truncf %160 : vector<32x128xf32> to vector<32x128xbf16>
    %c0_54 = arith.constant 0 : index
    %c0_55 = arith.constant 0 : index
    %c0_56 = arith.constant 0 : index
    %162 = vector.load %arg11[%c0_54, %c0_55, %c0_56] : memref<1x128x512xbf16, #tpu.memory_space<vmem>>, vector<1x128x512xbf16>
    %163 = vector.shape_cast %162 : vector<1x128x512xbf16> to vector<128x512xbf16>
    %cst_57 = arith.constant dense<0.000000e+00> : vector<32x512xf32>
    %164 = tpu.matmul %161, %163, %cst_57 {dimension_numbers = #tpu.dot_dimension_numbers<[1], [0], [0], [1], [0, 0, 1, 1], [], []>} : vector<32x128xbf16>, vector<128x512xbf16>, vector<32x512xf32> -> vector<32x512xf32>
    %c0_58 = arith.constant 0 : index
    %c0_59 = arith.constant 0 : index
    %c0_60 = arith.constant 0 : index
    %165 = vector.load %arg12[%c0_58, %c0_59, %c0_60] : memref<1x1x512xf32, #tpu.memory_space<vmem>>, vector<1x1x512xf32>
    %166 = vector.shape_cast %165 : vector<1x1x512xf32> to vector<1x512xf32>
    %167 = vector.broadcast %166 : vector<1x512xf32> to vector<32x512xf32>
    %168 = arith.addf %164, %167 : vector<32x512xf32>
    %cst_61 = arith.constant 5.000000e-01 : f32
    %169 = vector.broadcast %cst_61 : f32 to vector<32x512xf32>
    %170 = arith.mulf %169, %168 : vector<32x512xf32>
    %cst_62 = arith.constant 0.707106769 : f32
    %171 = vector.broadcast %cst_62 : f32 to vector<32x512xf32>
    %172 = arith.mulf %168, %171 : vector<32x512xf32>
    %173 = math.erf %172 : vector<32x512xf32>
    %cst_63 = arith.constant 1.000000e+00 : f32
    %174 = vector.broadcast %cst_63 : f32 to vector<32x512xf32>
    %175 = arith.addf %174, %173 : vector<32x512xf32>
    %176 = arith.mulf %170, %175 : vector<32x512xf32>
    %177 = arith.truncf %176 : vector<32x512xf32> to vector<32x512xbf16>
    %c0_64 = arith.constant 0 : index
    %c0_65 = arith.constant 0 : index
    %c0_66 = arith.constant 0 : index
    %178 = vector.load %arg13[%c0_64, %c0_65, %c0_66] : memref<1x512x128xbf16, #tpu.memory_space<vmem>>, vector<1x512x128xbf16>
    %179 = vector.shape_cast %178 : vector<1x512x128xbf16> to vector<512x128xbf16>
    %cst_67 = arith.constant dense<0.000000e+00> : vector<32x128xf32>
    %180 = tpu.matmul %177, %179, %cst_67 {dimension_numbers = #tpu.dot_dimension_numbers<[1], [0], [0], [1], [0, 0, 1, 1], [], []>} : vector<32x512xbf16>, vector<512x128xbf16>, vector<32x128xf32> -> vector<32x128xf32>
    %c0_68 = arith.constant 0 : index
    %c0_69 = arith.constant 0 : index
    %c0_70 = arith.constant 0 : index
    %181 = vector.load %arg14[%c0_68, %c0_69, %c0_70] : memref<1x1x128xf32, #tpu.memory_space<vmem>>, vector<1x1x128xf32>
    %182 = vector.shape_cast %181 : vector<1x1x128xf32> to vector<1x128xf32>
    %183 = vector.broadcast %182 : vector<1x128xf32> to vector<32x128xf32>
    %184 = arith.addf %180, %183 : vector<32x128xf32>
    %185 = arith.addf %184, %160 : vector<32x128xf32>
    %c0_71 = arith.constant 0 : index
    %c0_72 = arith.constant 0 : index
    %c0_73 = arith.constant 0 : index
    %186 = vector.load %arg15[%c0_71, %c0_72, %c0_73] : memref<1x1x128xf32, #tpu.memory_space<vmem>>, vector<1x1x128xf32>
    %187 = vector.shape_cast %186 : vector<1x1x128xf32> to vector<1x128xf32>
    %c0_74 = arith.constant 0 : index
    %c0_75 = arith.constant 0 : index
    %c0_76 = arith.constant 0 : index
    %188 = vector.load %arg16[%c0_74, %c0_75, %c0_76] : memref<1x1x128xf32, #tpu.memory_space<vmem>>, vector<1x1x128xf32>
    %189 = vector.shape_cast %188 : vector<1x1x128xf32> to vector<1x128xf32>
    %cst_77 = arith.constant dense<0.000000e+00> : vector<32xf32>
    %190 = vector.multi_reduction <add>, %185, %cst_77 [1] : vector<32x128xf32> to vector<32xf32>
    %191 = vector.shape_cast %190 : vector<32xf32> to vector<32x1xf32>
    %cst_78 = arith.constant 1.280000e+02 : f32
    %192 = vector.broadcast %cst_78 : f32 to vector<32x1xf32>
    %193 = arith.divf %191, %192 : vector<32x1xf32>
    %194 = vector.broadcast %193 : vector<32x1xf32> to vector<32x128xf32>
    %195 = arith.subf %185, %194 : vector<32x128xf32>
    %196 = vector.broadcast %193 : vector<32x1xf32> to vector<32x128xf32>
    %197 = arith.subf %185, %196 : vector<32x128xf32>
    %198 = arith.mulf %195, %197 : vector<32x128xf32>
    %cst_79 = arith.constant dense<0.000000e+00> : vector<32xf32>
    %199 = vector.multi_reduction <add>, %198, %cst_79 [1] : vector<32x128xf32> to vector<32xf32>
    %200 = vector.shape_cast %199 : vector<32xf32> to vector<32x1xf32>
    %cst_80 = arith.constant 1.280000e+02 : f32
    %201 = vector.broadcast %cst_80 : f32 to vector<32x1xf32>
    %202 = arith.divf %200, %201 : vector<32x1xf32>
    %203 = vector.broadcast %193 : vector<32x1xf32> to vector<32x128xf32>
    %204 = arith.subf %185, %203 : vector<32x128xf32>
    %cst_81 = arith.constant 9.99999996E-13 : f32
    %205 = vector.broadcast %cst_81 : f32 to vector<32x1xf32>
    %206 = arith.addf %202, %205 : vector<32x1xf32>
    %207 = math.rsqrt %206 : vector<32x1xf32>
    %208 = vector.broadcast %207 : vector<32x1xf32> to vector<32x128xf32>
    %209 = arith.mulf %204, %208 : vector<32x128xf32>
    %210 = vector.broadcast %187 : vector<1x128xf32> to vector<32x128xf32>
    %211 = arith.mulf %209, %210 : vector<32x128xf32>
    %212 = vector.broadcast %189 : vector<1x128xf32> to vector<32x128xf32>
    %213 = arith.addf %211, %212 : vector<32x128xf32>
    %c0_82 = arith.constant 0 : index
    %c0_83 = arith.constant 0 : index
    %214 = vector.load %arg22[%c0_82, %c0_83] : memref<32x128xf32, #tpu.memory_space<vmem>>, vector<32x128xf32>
    tpu.vector_store %arg22[%c0_82, %c0_83], %213 {strides = array<i32>} : memref<32x128xf32, #tpu.memory_space<vmem>>, vector<32x128xf32>,
    %c1_i32 = arith.constant 1 : i32
    %215 = arith.cmpi eq, %arg0, %c1_i32 : i32
    %216 = arith.extui %215 : i1 to i32
    %c0_i32_84 = arith.constant 0 : i32
    %217 = arith.cmpi ne, %216, %c0_i32_84 : i32
    scf.if %217 {
      %218 = vector.extract_strided_slice %213 {offsets = [0, 0], sizes = [1, 128], strides = [1, 1]} : vector<32x128xf32> to vector<1x128xf32>
      %219 = vector.extract_strided_slice %213 {offsets = [16, 0], sizes = [1, 128], strides = [1, 1]} : vector<32x128xf32> to vector<1x128xf32>
      %220 = tpu.concatenate %218, %219 in 0 : vector<1x128xf32>, vector<1x128xf32> -> vector<2x128xf32>
      %221 = arith.truncf %220 : vector<2x128xf32> to vector<2x128xbf16>
      %c0_85 = arith.constant 0 : index
      %c0_86 = arith.constant 0 : index
      %222 = vector.load %arg17[%c0_85, %c0_86] : memref<128x128xbf16, #tpu.memory_space<vmem>>, vector<128x128xbf16>
      %cst_87 = arith.constant dense<0.000000e+00> : vector<2x128xf32>
      %223 = tpu.matmul %221, %222, %cst_87 {dimension_numbers = #tpu.dot_dimension_numbers<[1], [0], [0], [1], [0, 0, 1, 1], [], []>} : vector<2x128xbf16>, vector<128x128xbf16>, vector<2x128xf32> -> vector<2x128xf32>
      %c0_88 = arith.constant 0 : index
      %c0_89 = arith.constant 0 : index
      %224 = vector.load %arg18[%c0_88, %c0_89] : memref<1x128xf32, #tpu.memory_space<vmem>>, vector<1x128xf32>
      %225 = vector.broadcast %224 : vector<1x128xf32> to vector<2x128xf32>
      %226 = arith.addf %223, %225 : vector<2x128xf32>
      %227 = math.tanh %226 : vector<2x128xf32>
      %228 = arith.truncf %227 : vector<2x128xf32> to vector<2x128xbf16>
      %c0_90 = arith.constant 0 : index
      %c0_91 = arith.constant 0 : index
      %229 = vector.load %arg19[%c0_90, %c0_91] : memref<128x128xbf16, #tpu.memory_space<vmem>>, vector<128x128xbf16>
      %cst_92 = arith.constant dense<0.000000e+00> : vector<2x128xf32>
      %230 = tpu.matmul %228, %229, %cst_92 {dimension_numbers = #tpu.dot_dimension_numbers<[1], [0], [0], [1], [0, 0, 1, 1], [], []>} : vector<2x128xbf16>, vector<128x128xbf16>, vector<2x128xf32> -> vector<2x128xf32>
      %c0_93 = arith.constant 0 : index
      %c0_94 = arith.constant 0 : index
      %231 = vector.load %arg20[%c0_93, %c0_94] : memref<1x128xf32, #tpu.memory_space<vmem>>, vector<1x128xf32>
      %232 = vector.broadcast %231 : vector<1x128xf32> to vector<2x128xf32>
      %233 = arith.addf %230, %232 : vector<2x128xf32>
      %c0_95 = arith.constant 0 : index
      %c0_96 = arith.constant 0 : index
      %234 = vector.load %arg21[%c0_95, %c0_96] : memref<2x128xf32, #tpu.memory_space<vmem>>, vector<2x128xf32>
      tpu.vector_store %arg21[%c0_95, %c0_96], %233 {strides = array<i32>} : memref<2x128xf32, #tpu.memory_space<vmem>>, vector<2x128xf32>,
    } else {
    }
    return
  }
  func.func @transform_0(%arg0: i32) -> (i32, i32) {
    %c0_i32 = arith.constant 0 : i32
    %c0_i32_0 = arith.constant 0 : i32
    %c0_i32_1 = arith.constant 0 : i32
    return %c0_i32, %c0_i32_0 : i32, i32
  }
  func.func @transform_1(%arg0: i32) -> (i32, i32) {
    %c0_i32 = arith.constant 0 : i32
    %c0_i32_0 = arith.constant 0 : i32
    %c0_i32_1 = arith.constant 0 : i32
    return %c0_i32, %c0_i32_0 : i32, i32
  }
  func.func @transform_2(%arg0: i32) -> (i32, i32) {
    %c0_i32 = arith.constant 0 : i32
    %c0_i32_0 = arith.constant 0 : i32
    %c0_i32_1 = arith.constant 0 : i32
    return %c0_i32, %c0_i32_0 : i32, i32
  }
  func.func @transform_3(%arg0: i32) -> (i32, i32) {
    %c0_i32 = arith.constant 0 : i32
    %c0_i32_0 = arith.constant 0 : i32
    %c0_i32_1 = arith.constant 0 : i32
    return %c0_i32, %c0_i32_0 : i32, i32
  }
  func.func @transform_4(%arg0: i32) -> (i32, i32, i32) {
    %c0_i32 = arith.constant 0 : i32
    %c0_i32_0 = arith.constant 0 : i32
    %c0_i32_1 = arith.constant 0 : i32
    return %arg0, %c0_i32, %c0_i32_0 : i32, i32, i32
  }
  func.func @transform_5(%arg0: i32) -> (i32, i32, i32) {
    %c0_i32 = arith.constant 0 : i32
    %c0_i32_0 = arith.constant 0 : i32
    %c0_i32_1 = arith.constant 0 : i32
    return %arg0, %c0_i32, %c0_i32_0 : i32, i32, i32
  }
  func.func @transform_6(%arg0: i32) -> (i32, i32, i32) {
    %c0_i32 = arith.constant 0 : i32
    %c0_i32_0 = arith.constant 0 : i32
    %c0_i32_1 = arith.constant 0 : i32
    return %arg0, %c0_i32, %c0_i32_0 : i32, i32, i32
  }
  func.func @transform_7(%arg0: i32) -> (i32, i32, i32) {
    %c0_i32 = arith.constant 0 : i32
    %c0_i32_0 = arith.constant 0 : i32
    %c0_i32_1 = arith.constant 0 : i32
    return %arg0, %c0_i32, %c0_i32_0 : i32, i32, i32
  }
  func.func @transform_8(%arg0: i32) -> (i32, i32, i32) {
    %c0_i32 = arith.constant 0 : i32
    %c0_i32_0 = arith.constant 0 : i32
    %c0_i32_1 = arith.constant 0 : i32
    return %arg0, %c0_i32, %c0_i32_0 : i32, i32, i32
  }
  func.func @transform_9(%arg0: i32) -> (i32, i32, i32) {
    %c0_i32 = arith.constant 0 : i32
    %c0_i32_0 = arith.constant 0 : i32
    %c0_i32_1 = arith.constant 0 : i32
    return %arg0, %c0_i32, %c0_i32_0 : i32, i32, i32
  }
  func.func @transform_10(%arg0: i32) -> (i32, i32, i32) {
    %c0_i32 = arith.constant 0 : i32
    %c0_i32_0 = arith.constant 0 : i32
    %c0_i32_1 = arith.constant 0 : i32
    return %arg0, %c0_i32, %c0_i32_0 : i32, i32, i32
  }
  func.func @transform_11(%arg0: i32) -> (i32, i32, i32) {
    %c0_i32 = arith.constant 0 : i32
    %c0_i32_0 = arith.constant 0 : i32
    %c0_i32_1 = arith.constant 0 : i32
    return %arg0, %c0_i32, %c0_i32_0 : i32, i32, i32
  }
  func.func @transform_12(%arg0: i32) -> (i32, i32, i32) {
    %c0_i32 = arith.constant 0 : i32
    %c0_i32_0 = arith.constant 0 : i32
    %c0_i32_1 = arith.constant 0 : i32
    return %arg0, %c0_i32, %c0_i32_0 : i32, i32, i32
  }
  func.func @transform_13(%arg0: i32) -> (i32, i32, i32) {
    %c0_i32 = arith.constant 0 : i32
    %c0_i32_0 = arith.constant 0 : i32
    %c0_i32_1 = arith.constant 0 : i32
    return %arg0, %c0_i32, %c0_i32_0 : i32, i32, i32
  }
  func.func @transform_14(%arg0: i32) -> (i32, i32, i32) {
    %c0_i32 = arith.constant 0 : i32
    %c0_i32_0 = arith.constant 0 : i32
    %c0_i32_1 = arith.constant 0 : i32
    return %arg0, %c0_i32, %c0_i32_0 : i32, i32, i32
  }
  func.func @transform_15(%arg0: i32) -> (i32, i32, i32) {
    %c0_i32 = arith.constant 0 : i32
    %c0_i32_0 = arith.constant 0 : i32
    %c0_i32_1 = arith.constant 0 : i32
    return %arg0, %c0_i32, %c0_i32_0 : i32, i32, i32
  }
  func.func @transform_16(%arg0: i32) -> (i32, i32) {
    %c0_i32 = arith.constant 0 : i32
    %c0_i32_0 = arith.constant 0 : i32
    %c0_i32_1 = arith.constant 0 : i32
    return %c0_i32, %c0_i32_0 : i32, i32
  }
  func.func @transform_17(%arg0: i32) -> (i32, i32) {
    %c0_i32 = arith.constant 0 : i32
    %c0_i32_0 = arith.constant 0 : i32
    %c0_i32_1 = arith.constant 0 : i32
    return %c0_i32, %c0_i32_0 : i32, i32
  }
  func.func @transform_18(%arg0: i32) -> (i32, i32) {
    %c0_i32 = arith.constant 0 : i32
    %c0_i32_0 = arith.constant 0 : i32
    %c0_i32_1 = arith.constant 0 : i32
    return %c0_i32, %c0_i32_0 : i32, i32
  }
  func.func @transform_19(%arg0: i32) -> (i32, i32) {
    %c0_i32 = arith.constant 0 : i32
    %c0_i32_0 = arith.constant 0 : i32
    %c0_i32_1 = arith.constant 0 : i32
    return %c0_i32, %c0_i32_0 : i32, i32
  }
  func.func @transform_20(%arg0: i32) -> (i32, i32) {
    %c0_i32 = arith.constant 0 : i32
    %c0_i32_0 = arith.constant 0 : i32
    %c0_i32_1 = arith.constant 0 : i32
    return %c0_i32, %c0_i32_0 : i32, i32
  }
}

</mosaic_0001>

<bundles_post_ra>
// kernel: bert_classifier_forward.1
= control target key start
LH: loop header
LB: loop body
LE: loop exit
PB: predicated region body
PF: predicated region fallthrough
CT: control target
= control target key end

     0   :  { %s4999_s0 = inlined_call_operand.vmem [shape: f32[32,128], index: 0, kind: input, shape index: {}]   ;;  %s5000_s1 = inlined_call_operand.vmem [shape: f32[2,16], index: 1, kind: input, shape index: {}]   ;;  %s5001_s2 = inlined_call_operand.vmem [shape: f32[1,128], index: 2, kind: input, shape index: {}]   ;;  %s5002_s3 = inlined_call_operand.vmem [shape: f32[1,128], index: 3, kind: input, shape index: {}]   ;;  %s5003_s4 = inlined_call_operand.hbm [shape: bf16[2,128,384], index: 4, kind: input, shape index: {}]   ;;  %s5004_s5 = inlined_call_operand.vmem [shape: f32[2,1,384], index: 5, kind: input, shape index: {}]   ;;  %s5005_s6 = inlined_call_operand.vmem [shape: bf16[2,128,128], index: 6, kind: input, shape index: {}]   ;;  %s5006_s7 = inlined_call_operand.vmem [shape: f32[2,1,128], index: 7, kind: input, shape index: {}]   ;;  %s5007_s8 = inlined_call_operand.vmem [shape: f32[2,1,128], index: 8, kind: input, shape index: {}]   ;;  %s5008_s9 = inlined_call_operand.vmem [shape: f32[2,1,128], index: 9, kind: input, shape index: {}]   ;;  %s5009_s10 = inlined_call_operand.vmem [shape: bf16[2,128,512], index: 10, kind: input, shape index: {}]   ;;  %s5010_s11 = inlined_call_operand.vmem [shape: f32[2,1,512], index: 11, kind: input, shape index: {}]   ;;  %s5011_s12 = inlined_call_operand.hbm [shape: bf16[2,512,128], index: 12, kind: input, shape index: {}]   ;;  %s5012_s13 = inlined_call_operand.vmem [shape: f32[2,1,128], index: 13, kind: input, shape index: {}]   ;;  %s5013_s14 = inlined_call_operand.vmem [shape: f32[2,1,128], index: 14, kind: input, shape index: {}]   ;;  %s5014_s15 = inlined_call_operand.vmem [shape: f32[2,1,128], index: 15, kind: input, shape index: {}]   ;;  %s5015_s16 = inlined_call_operand.vmem [shape: bf16[128,128], index: 16, kind: input, shape index: {}]   ;;  %s5016_s17 = inlined_call_operand.vmem [shape: f32[1,128], index: 17, kind: input, shape index: {}]   ;;  %s5017_s18 = inlined_call_operand.vmem [shape: bf16[128,128], index: 18, kind: input, shape index: {}]   ;;  %s5018_s19 = inlined_call_operand.vmem [shape: f32[1,128], index: 19, kind: input, shape index: {}]   ;;  %s5019_s20 = inlined_call_operand.hbm [shape: f32[2,128], index: 20, kind: output, shape index: {}]  }
   0x1   :  { %5031 = sst [smem:[#allocation16_spill]] %s4999_s0 }
   0x2   :  { %5032 = sst [smem:[#allocation17_spill]] %s5000_s1 }
   0x3   :  { %5033 = sst [smem:[#allocation18_spill]] %s5001_s2 }
   0x4   :  { %5034 = sst [smem:[#allocation19_spill]] %s5002_s3 }
   0x5   :  { %5035 = sst [smem:[#allocation20_spill]] %s5003_s4 }
   0x6   :  { %5036 = sst [smem:[#allocation21_spill]] %s5005_s6 }
   0x7   :  { %5037 = sst [smem:[#allocation22_spill]] %s5011_s12 }
   0x8   :  { %5038 = sst [smem:[#allocation23_spill]] %s5015_s16 }
   0x9   :  { %5039 = sst [smem:[#allocation24_spill]] %s5016_s17 }
   0xa   :  { %5040 = sst [smem:[#allocation25_spill]] %s5017_s18 }
   0xb   :  { %5041 = sst [smem:[#allocation26_spill]] %s5018_s19 }
   0xc   :  { %5042 = sst [smem:[#allocation27_spill]] %s5019_s20 }
   0xd   :  { %25 = vsyncpa [#allocation4], 0 }
   0xe   :  { %27 = vsyncpa [#allocation4 + $0x1], 0 }
   0xf   :  { %28 = vsyncpa [#allocation7], 0 }
  0x10   :  { %30 = vsyncpa [#allocation7 + $0x1], 0 }
  0x11   :  { %31 = vsyncpa [#allocation5], 0  ;;  %s4260_s1 = smov 0   ;;  %s4262_s22 = smov 0  }
  0x12   :  { %s4264_s23 = smov 0   ;;  %s4266_s24 = smov 0  }
  0x13 LB: > { %5043 = sst [smem:[#allocation12_spill]] %s4132_s22  ;;  %s4279_s2 = sadd.s32 4294967295, %s4140_s24   ;;  %s4140_s24 = sphi %s4266_s24, %s5067_s24   ;;  %s4136_s23 = sphi %s4264_s23, %s5070_s23   ;;  %s4132_s22 = sphi %s4262_s22, %s5069_s22   ;;  %s4128_s1 = sphi %s4260_s1, %s5068_s1  }
  0x14   : > { %5044 = sst [smem:[#allocation13_spill]] %s4136_s23  ;;  %s4282_s25 = sadd.s32 1, %s4140_s24  }
  0x15   : > { %5045 = sst [smem:[#allocation14_spill]] %s4282_s25  ;;  %s125_s3 = ssub.s32 %s4140_s24, %s4282_s25 }
  0x16   : > { %s128_s26 = sadd.s32 1, %s4136_s23  ;;  %p126_p0 = scmp.eq.s32.totalorder %s125_s3, 0 }
  0x17   : > { %p135_p1 = scmp.ne.s32.totalorder %s4136_s23, %s4132_s22  ;;  %p136_p2 = scmp.eq.s32.totalorder %s4140_s24, 0 }
  0x18   : > { %p141_p3 = scmp.ne.s32.totalorder %s4132_s22, %s4128_s1  ;;  %p142_p5 = scmp.eq.s32.totalorder %s4279_s2, 0 }
  0x19   : > { %s4292_s27 = scalar_select %p126_p0, %s4136_s23, %s128_s26  }
  0x1a   : > { %p137_p4 = por %p136_p2, %p135_p1  ;;  %p3740_p6 = scmp.lt.s32.totalorder %s4140_s24, 2 }
  0x1b   : > { %5046 = sst [smem:[#allocation15_spill]] %s4292_s27  ;;  %p4296_p7 = por %p142_p5, %p141_p3 }
  0x1c   : > { %s4301_s4 = sand.u32 1, %s4136_s23   ;;  %s3722_s30 = smul.u32 3072, %s4140_s24 }
  0x1d   : > { %s5047_s28 = scalar_select %p4296_p7, 1, 0 }
  0x1e   : > { %s3721_s29 = smul.u32 192, %s4301_s4  ;;  %p4305_p8 = pnand %p3740_p6, %p137_p4 }
  0x1f   : > { %s5049_s3 = sld [smem:[#allocation20_spill]]  ;;  %s581_s25 = scalar_lea.sflag [#allocation4], %s4301_s4 }
  0x20   : > { %s584_s27 = scalar_lea.vmem [#allocation3], %s3721_s29  ;;  %p4014_p11 = pneg %p4305_p8 }
  0x21   : > { %s591_s23 = sshll.u32 %s584_s27, 4  ;;  %s4314_s23 = int_to_ptr.vmem [resolvable:$true] %s591_s23 }
  0x25   : > { %s4312_s26 = scalar_lea.hbm %s5049_s3, %s3722_s30  ;;  %s4017_s1 = scalar_lea.hbm %s5049_s3, 6144 }
  0x26   : > { %s4012_s20 = scalar_lea.hbm %s4312_s26, 3072  ;;  %p4018_p0 = scmp.lt.u32.totalorder %s4312_s26, %s5049_s3 }
  0x27   : > { %p4013_p10 = scmp.ne.s32.totalorder %s4312_s26, %s4012_s20  ;;  %p4019_p1 = scmp.lt.u32.totalorder %s4017_s1, %s4012_s20 }
  0x28   : > { %p4021_p3 = scmp.lt.u32.totalorder %s4012_s20, %s4312_s26 }
  0x29   : > { %p4015_p12 = pnand %p4014_p11, %p4013_p10  ;;  %p4020_p2 = por %p4019_p1, %p4018_p0 }
  0x2b   : > { %p4016_p13 = pneg %p4015_p12  ;;  %p4022_p4 = por %p4021_p3, %p4020_p2 }
  0x2d   : > { %p4023_p5 = pnand %p4022_p4, %p4016_p13 }
  0x2f   : > { %4026 = shalt.err (!%p4023_p5)
}
  0x30   : > { %s4027_s27 = scalar_lea.vmem %s4314_s23, 3072  ;;  %s4142_s29 = smov [#allocation3]  }
  0x31   : > { %p4028_p6 = scmp.ne.s32.totalorder %s4314_s23, %s4027_s27  ;;  %s4032_s30 = sshll.u32 %s4142_s29, 4  ;;  %s4033_s30 = int_to_ptr.vmem [resolvable:$false] %s4032_s30 }
  0x32   : > { %s4034_s17 = scalar_lea.vmem %s4033_s30, 6144  ;;  %p4035_p9 = scmp.lt.s32.totalorder %s4314_s23, %s4033_s30 }
  0x33   : > { %p4030_p10 = pnand %p4028_p6, %p4014_p11  ;;  %p4036_p0 = scmp.lt.s32.totalorder %s4034_s17, %s4027_s27 }
  0x35   : > { %p4031_p12 = pneg %p4030_p10  ;;  %p4037_p1 = por %p4036_p0, %p4035_p9 }
  0x37   : > { %p4038_p2 = pnand %p4037_p1, %p4031_p12 }
  0x39   : > { %4041 = shalt.err (!%p4038_p2)
}
  0x3a   : > { %s4143_s19 = smov 192   ;;  %s4144_s20 = smov 12  }
  0x3b   : > { %3736 = dma.hbm_to_vmem [thread:$0]  (!%p4305_p8), %s4312_s26, 3072, %s4314_s23, %s581_s25, %s4143_s19, %s4143_s19, %s4144_s20  }
  0x3c   : > { %p686_p13 = scmp.lt.s32.totalorder %s4140_s24, 3  ;;  %s3292_s21 = sshll.u32 %s4301_s4, 8 }
  0x3d   : > { %s3442_s1 = sshll.u32 %s4140_s24, 12  ;;  %p5050_p9 = scmp.ge.s32.totalorder %s4140_s24, 1 }
  0x3e   : > { %s5052_s12 = sld [smem:[#allocation22_spill]]  ;;  %s653_s3 = scalar_lea.vmem [#allocation6], %s3292_s21 }
  0x3f   : > { %p4350_p3 = pnand %p5050_p9, %p686_p13  ;;  %s660_s18 = sshll.u32 %s653_s3, 4  ;;  %s4359_s18 = int_to_ptr.vmem [resolvable:$true] %s660_s18 }
  0x40   : > { %s650_s23 = scalar_lea.sflag [#allocation7], %s4301_s4 }
  0x44   : > { %s4357_s17 = scalar_lea.hbm %s5052_s12, %s3442_s1  ;;  %s4047_s19 = scalar_lea.hbm %s5052_s12, 8192 }
  0x45   : > { %s4042_s25 = scalar_lea.hbm %s4357_s17, 4096  ;;  %p4048_p10 = scmp.lt.u32.totalorder %s4357_s17, %s5052_s12 }
  0x46   : > { %p4043_p4 = scmp.ne.s32.totalorder %s4357_s17, %s4042_s25  ;;  %p4049_p12 = scmp.lt.u32.totalorder %s4047_s19, %s4042_s25 }
  0x47   : > { %p4051_p1 = scmp.lt.u32.totalorder %s4042_s25, %s4357_s17 }
  0x48   : > { %p4045_p5 = pnand %p4043_p4, %p4014_p11  ;;  %p4050_p0 = por %p4049_p12, %p4048_p10 }
  0x4a   : > { %p4046_p6 = pneg %p4045_p5  ;;  %p4052_p2 = por %p4051_p1, %p4050_p0 }
  0x4c   : > { %p4053_p13 = pnand %p4052_p2, %p4046_p6 }
  0x4e   : > { %4056 = shalt.err (!%p4053_p13)
}
  0x4f   : > { %s4057_s3 = scalar_lea.vmem %s4359_s18, 4096  ;;  %s4145_s21 = smov [#allocation6]  }
  0x50   : > { %p4058_p9 = scmp.ne.s32.totalorder %s4359_s18, %s4057_s3  ;;  %s4062_s29 = sshll.u32 %s4145_s21, 4  ;;  %s4063_s29 = int_to_ptr.vmem [resolvable:$false] %s4062_s29 }
  0x51   : > { %s4064_s30 = scalar_lea.vmem %s4063_s29, 8192  ;;  %p4065_p7 = scmp.lt.s32.totalorder %s4359_s18, %s4063_s29 }
  0x52   : > { %p4060_p4 = pnand %p4058_p9, %p4014_p11  ;;  %p4066_p10 = scmp.lt.s32.totalorder %s4064_s30, %s4057_s3 }
  0x54   : > { %p4061_p5 = pneg %p4060_p4  ;;  %p4067_p12 = por %p4066_p10, %p4065_p7 }
  0x56   : > { %p4068_p0 = pnand %p4067_p12, %p4061_p5 }
  0x58   : > { %4071 = shalt.err (!%p4068_p0)
}
  0x59   : > { %s4146_s25 = smov 64   ;;  %s4147_s24 = smov 4  }
  0x5a   : > { %3739 = dma.hbm_to_vmem [thread:$0]  (!%p4305_p8), %s4357_s17, 4096, %s4359_s18, %s650_s23, %s4146_s25, %s4146_s25, %s4147_s24  }
  0x5b   : > { %690 = sbr.rel (%p4350_p3) target bundleno = 4849 (0x12f1), region = 100  ;;  %s692_s26 = sand.u32 (!%p4350_p3), 1, %s4132_s22  }
  0x5c   : > { %s3723_s19 = smul.u32 (!%p4350_p3), 192, %s692_s26  ;;  %s693_s20 = scalar_lea.sflag (!%p4350_p3), [#allocation4], %s692_s26 }
  0x5d   : > { %p5053_p7 = scmp.ne.s32.totalorder (!%p4350_p3), %s5047_s28, 0 }
  0x5e   : > { %s4390_s1 = scalar_lea.vmem (!%p4350_p3), [#allocation3], %s3723_s19 }
  0x62   : > { %4115 = dma.done.wait (%p5053_p7), %s693_s20, 3072  }
  0x63   : > { %4117 = vsyncadd (%p5053_p7), %s693_s20, 4294964224  ;;  %s3296_s3 = sshll.u32 %s692_s26, 8  ;;  %s702_s0 = scalar_lea.sflag [#allocation7], %s692_s26 }
  0x64   : > { %s4396_s4 = scalar_lea.vmem [#allocation6], %s3296_s3 }
  0x65   : > { %4119 = dma.done.wait (%p5053_p7), %s702_s0, 4096  }
  0x66   : > { %4121 = vsyncadd (%p5053_p7), %s702_s0, 4294963200  ;;  %p798_p8 = scmp.lt.s32.totalorder %s4279_s2, 1  ;;  %s5054_s6 = sld [smem:[#allocation21_spill]] }
  0x67   : > { %p3302_p11 = scmp.ne.s32.totalorder %s4279_s2, 0 }
  0x68   : > { %s4404_s18 = scalar_select %p798_p8, %s4279_s2, 1 }
  0x69   : > { %838 = sbr.rel (%p3302_p11) target bundleno = 432 (0x1b0), region = 112  ;;  %s5055_s25 = sld [smem:[#allocation16_spill]] (!%p3302_p11) }
  0x6a   : > { %s3724_s27 = smul.u32 3, %s4404_s18  ;;  %s3443_s17 = sshll.u32 %s4404_s18, 6 }
  0x6b   : > { %s3444_s23 = sshll.u32 %s4404_s18, 8  ;;  %s3301_s29 = sshll.u32 %s4404_s18, 2 }
  0x6c   : > { %s4411_s21 = scalar_lea.vmem %s5054_s6, %s3443_s17  ;;  %s4420_s19 = scalar_lea.vmem %s5004_s5, %s3724_s27 }
  0x6d   : > { %s4434_s6 = scalar_lea.vmem %s5009_s10, %s3444_s23  ;;  %s4440_s27 = scalar_lea.vmem %s5010_s11, %s3301_s29 }
  0x6e   : > { %s827_s20 = scalar_lea.vmem %s5012_s13, %s4404_s18  ;;  %s830_s12 = scalar_lea.vmem %s5013_s14, %s4404_s18 }
  0x6f   : > { %s833_s17 = scalar_lea.vmem %s5014_s15, %s4404_s18  ;;  %v839_v0 = vld [vmem:[%s5055_s25] sm:$0xff] (!%p3302_p11)  ;;  %v841_v1 = vld [vmem:[%s5055_s25 + $0x10] sm:$0xff] (!%p3302_p11)  ;;  %v840_v2 = vld [vmem:[%s5055_s25 + $0x8] sm:$0xff] (!%p3302_p11)  ;;  %s5056_s23 = sld [smem:[#allocation18_spill]] (!%p3302_p11) }
  0x70   : > { %845 = vadd.xlane.f32.xlu0 %v839_v0  ;;  %849 = vadd.xlane.f32.xlu1 %v841_v1  ;;  %v842_v3 = vld [vmem:[%s5055_s25 + $0x18] sm:$0xff]  ;;  %s5057_s30 = sld [smem:[#allocation19_spill]] }
  0x74   : > { %847 = vadd.xlane.f32.xlu0 %v840_v2  ;;  %851 = vadd.xlane.f32.xlu1 %v842_v3 }
  0x75   : > { %v3303_v33 = vld [vmem:[%s5056_s23] ss:$0 sm:$0xff] }
  0x76   : > { %v3304_v35 = vld [vmem:[%s5057_s30] ss:$0 sm:$0xff] }
  0xfd   : > { %v846_v4 = vpop.xlane.xlu0 %845  ;;  %v850_v5 = vpop.xlane.xlu1 %849 }
  0xfe   : > { %v854_v6 = vmul.f32 0.0078125, %v846_v4  ;;  %v856_v7 = vmul.f32 0.0078125, %v850_v5 }
 0x100   : > { %v858_v8 = vsub.f32 %v839_v0, %v854_v6  ;;  %v860_v9 = vsub.f32 %v841_v1, %v856_v7 }
 0x101   : > { %v848_v10 = vpop.xlane.xlu0 %847  ;;  %v852_v11 = vpop.xlane.xlu1 %851 }
 0x102   : > { %v855_v12 = vmul.f32 0.0078125, %v848_v10  ;;  %v862_v13 = vmul.f32 %v858_v8, %v858_v8  ;;  %v857_v14 = vmul.f32 0.0078125, %v852_v11  ;;  %v864_v17 = vmul.f32 %v860_v9, %v860_v9 }
 0x104   : > { %v859_v15 = vsub.f32 %v840_v2, %v855_v12  ;;  %866 = vadd.xlane.f32.xlu0 %v862_v13  ;;  %v861_v16 = vsub.f32 %v842_v3, %v857_v14 }
 0x106   : > { %v863_v18 = vmul.f32 %v859_v15, %v859_v15  ;;  %v865_v19 = vmul.f32 %v861_v16, %v861_v16 }
 0x108   : > { %870 = vadd.xlane.f32.xlu0 %v864_v17  ;;  %868 = vadd.xlane.f32.xlu1 %v863_v18 }
 0x10c   : > { %872 = vadd.xlane.f32.xlu1 %v865_v19 }
 0x191   : > { %v867_v20 = vpop.xlane.xlu0 %866 }
 0x192   : > { %v874_v21 = vmul.f32 0.0078125, %v867_v20 }
 0x194   : > { %v878_v22 = vadd.f32 1e-12, %v874_v21 }
 0x195   : > { %v869_v23 = vpop.xlane.xlu1 %868  ;;  %v871_v24 = vpop.xlane.xlu0 %870 }
 0x196   : > { %3786 = vrsqrt.f32 %v878_v22  ;;  %v875_v25 = vmul.f32 0.0078125, %v869_v23  ;;  %v876_v26 = vmul.f32 0.0078125, %v871_v24 }
 0x198   : > { %v879_v27 = vadd.f32 1e-12, %v875_v25  ;;  %v880_v28 = vadd.f32 1e-12, %v876_v26 }
 0x199   : > { %v873_v29 = vpop.xlane.xlu1 %872 }
 0x19a   : > { %3788 = vrsqrt.f32 %v879_v27  ;;  %v877_v30 = vmul.f32 0.0078125, %v873_v29 }
 0x19b   : > { %3790 = vrsqrt.f32 %v880_v28 }
 0x19c   : > { %v881_v31 = vadd.f32 1e-12, %v877_v30 }
 0x19e   : > { %3792 = vrsqrt.f32 %v881_v31 }
 0x1a0   : > { %v3787_v32 = vpop.eup %3786 }
 0x1a1   : > { %v886_v34 = vmul.f32 %v3787_v32, %v858_v8 }
 0x1a3   : > { %v896_v36 = vmul.f32 %v3303_v33, %v886_v34 }
 0x1a4   : > { %v3789_v37 = vpop.eup %3788 }
 0x1a5   : > { %v3791_v38 = vpop.eup %3790  ;;  %v906_v39 = vadd.f32 %v3304_v35, %v896_v36  ;;  %v887_v40 = vmul.f32 %v3789_v37, %v859_v15 }
 0x1a6   : > { %v888_v41 = vmul.f32 %v3791_v38, %v860_v9 }
 0x1a7   : > { %910 = vst [vmem:[#allocation2] sm:$0xff] %v906_v39  ;;  %v897_v42 = vmul.f32 %v3303_v33, %v887_v40 }
 0x1a8   : > { %v3793_v43 = vpop.eup %3792  ;;  %v898_v44 = vmul.f32 %v3303_v33, %v888_v41 }
 0x1a9   : > { %v907_v45 = vadd.f32 %v3304_v35, %v897_v42  ;;  %v889_v46 = vmul.f32 %v3793_v43, %v861_v16 }
 0x1aa   : > { %v908_v47 = vadd.f32 %v3304_v35, %v898_v44 }
 0x1ab   : > { %911 = vst [vmem:[#allocation2 + $0x8] sm:$0xff] %v907_v45  ;;  %v899_v48 = vmul.f32 %v3303_v33, %v889_v46 }
 0x1ac   : > { %912 = vst [vmem:[#allocation2 + $0x10] sm:$0xff] %v908_v47 }
 0x1ad   : > { %v909_v49 = vadd.f32 %v3304_v35, %v899_v48 }
 0x1af   : > { %913 = vst [vmem:[#allocation2 + $0x18] sm:$0xff] %v909_v49 }
 0x1b0 PF: > { %v3794_v50 = vld [vmem:[%s4390_s1 + $0x4] ss:$12 sps:$4 sm:$0xff]   ;;  %v3796_v51 = vld [vmem:[%s4390_s1] ss:$12 sps:$4 sm:$0xff]   ;;  %v4148_v52 = vmov 0   ;;  %v4149_v17 = vmov 0.0   ;;  %v954_v18 = vlaneseq  ;;  %s5059_s16 = scalar_lea.vmem %s5006_s7, %s4404_s18  ;;  %s5060_s22 = scalar_lea.vmem %s5007_s8, %s4404_s18 }
 0x1b1   : > { %1129 = vmatprep.mubr.bf16.mxu0 %v4148_v52  ;;  %1097 = vmatprep.subr.bf16.mxu0 %v3794_v50  ;;  %v3797_v53 = vld [vmem:[%s4390_s1 + $0x1c] ss:$12 sps:$4 sm:$0xff]   ;;  %v3799_v54 = vld [vmem:[%s4390_s1 + $0x18] ss:$12 sps:$4 sm:$0xff]   ;;  %v3800_v55 = vld [vmem:[%s4390_s1 + $0x34] ss:$12 sps:$4 sm:$0xff]   ;;  %s5061_s29 = scalar_lea.vmem %s5008_s9, %s4404_s18 }
 0x1b2   : > { %1098 = vmatpush1.bf16.msra.mxu0 %v3796_v51  ;;  %v3802_v56 = vld [vmem:[%s4390_s1 + $0x30] ss:$12 sps:$4 sm:$0xff]   ;;  %v3803_v57 = vld [vmem:[%s4390_s1 + $0x4c] ss:$12 sps:$4 sm:$0xff]   ;;  %v3805_v58 = vld [vmem:[%s4390_s1 + $0x48] ss:$12 sps:$4 sm:$0xff]  }
 0x1b3   : > { %1099 = vmatprep.subr.bf16.mxu0 %v3797_v53  ;;  %v3806_v59 = vld [vmem:[%s4390_s1 + $0x64] ss:$12 sps:$4 sm:$0xff]   ;;  %v4485_v61 = vld [vmem:[#allocation2 + $0x8] sm:$0xff]  ;;  %v3812_v5 = vld [vmem:[%s4390_s1 + $0x94] ss:$12 sps:$4 sm:$0xff]   ;;  %vm4150_vm0 = vmmov 0  }
 0x1b4   : > { %v4483_v60 = vld [vmem:[#allocation2] sm:$0xff]  ;;  %v3818_v63 = vld [vmem:[%s4390_s1 + $0x8] ss:$12 sps:$4 sm:$0xff]   ;;  %v3821_v6 = vld [vmem:[%s4390_s1 + $0x50] ss:$12 sps:$4 sm:$0xff]   ;;  %v4517_v19 = vshrl.u32 %v954_v18, 7 }
 0x1b5   : > { %v918_v62 = vpack.c.bf16 %v4485_v61, %v4483_v60  ;;  %v3819_v0 = vld [vmem:[%s4390_s1 + $0x20] ss:$12 sps:$4 sm:$0xff]   ;;  %3565 = vmatprep.subr.bf16.mxu1 %v3818_v63  ;;  %v3809_v2 = vld [vmem:[%s4390_s1 + $0x7c] ss:$12 sps:$4 sm:$0xff]   ;;  %v3820_v3 = vld [vmem:[%s4390_s1 + $0x38] ss:$12 sps:$4 sm:$0xff]  }
 0x1b6   : > { %1100 = vmatpush1.bf16.msra.mxu0 %v3799_v54  ;;  %v3808_v1 = vld [vmem:[%s4390_s1 + $0x60] ss:$12 sps:$4 sm:$0xff]   ;;  %3566 = vmatpush3.bf16.msra.mxu1 %v3818_v63  ;;  %v3811_v4 = vld [vmem:[%s4390_s1 + $0x78] ss:$12 sps:$4 sm:$0xff]   ;;  %v3814_v7 = vld [vmem:[%s4390_s1 + $0x90] ss:$12 sps:$4 sm:$0xff]  }
 0x1b7   : > { %1101 = vmatprep.subr.bf16.mxu0 %v3800_v55  ;;  %3581 = vmatprep.mubr.bf16.mxu1 %v918_v62  ;;  %v3815_v8 = vld [vmem:[%s4390_s1 + $0xac] ss:$12 sps:$4 sm:$0xff]   ;;  %v3822_v9 = vld [vmem:[%s4390_s1 + $0x68] ss:$12 sps:$4 sm:$0xff]   ;;  %v3825_v13 = vld [vmem:[%s4390_s1 + $0xb0] ss:$12 sps:$4 sm:$0xff]  }
 0x1b8   : > { %3567 = vmatprep.subr.bf16.mxu1 %v3819_v0  ;;  %v3817_v10 = vld [vmem:[%s4390_s1 + $0xa8] ss:$12 sps:$4 sm:$0xff]   ;;  %v3823_v11 = vld [vmem:[%s4390_s1 + $0x80] ss:$12 sps:$4 sm:$0xff]   ;;  %v3824_v12 = vld [vmem:[%s4390_s1 + $0x98] ss:$12 sps:$4 sm:$0xff]  }
 0x1b9   : > { %v4505_v14 = vld [vmem:[#allocation2 + $0x10] sm:$0xff]  ;;  %v4507_v15 = vld [vmem:[#allocation2 + $0x18] sm:$0xff]  ;;  %v4520_v20 = vsub.s32 0, %v4517_v19  ;;  %v952_v21 = vld [vmem:[%s4420_s19] sm:$0x7]  ;;  %v4524_v22 = vsub.s32 1, %v4517_v19 }
 0x1ba   : > { %1102 = vmatpush1.bf16.msra.mxu0 %v3802_v56  ;;  %3568 = vmatpush3.bf16.msra.mxu1 %v3819_v0  ;;  %v919_v16 = vpack.c.bf16 %v4507_v15, %v4505_v14  ;;  %vm1226_vm1 = vcmask 523264   ;;  %v964_v38 = vsub.s32 2, %v4517_v19  ;;  %s5058_s24 = sld [smem:[#allocation17_spill]]  ;;  %vm1274_vm2 = vcmask 130048   ;;  %s4151_s0 = smov 64   ;;  %v4574_v18 = vld [vmem:[%s4411_s21 + $0x8] sm:$0xff]  }
 0x1bb   : > { %1103 = vmatprep.subr.bf16.mxu0 %v3803_v57  ;;  %3569 = vmatprep.subr.bf16.mxu1 %v3820_v3  ;;  %v4527_v23 = vrot.slane %v952_v21, %v4520_v20  ;;  %v4530_v25 = vrot.slane %v952_v21, %v4524_v22  ;;  %p3419_p3 = scmp.ne.s32.totalorder %s4279_s2, 1 }
 0x1bc   : > { %v965_v39 = vrot.slane %v952_v21, %v964_v38  ;;  %vm4153_vm3 = vmmov (!%p3419_p3), 0   ;;  %s5063_s3 = sld [smem:[#allocation25_spill]] (!%p3419_p3)  ;;  %vm2878_vm4 = vcmask (!%p3419_p3), 1040384   ;;  %s5064_s1 = sld [smem:[#allocation24_spill]] (!%p3419_p3) }
 0x1be   : > { %1104 = vmatpush1.bf16.msra.mxu0 %v3805_v58  ;;  %3570 = vmatpush3.bf16.msra.mxu1 %v3820_v3 }
 0x1bf   : > { %1105 = vmatprep.subr.bf16.mxu0 %v3806_v59  ;;  %3571 = vmatprep.subr.bf16.mxu1 %v3821_v6 }
 0x1c0   : > { %v4553_v50 = vld [vmem:[%s5058_s24] sm:$0x3] }
 0x1c1   : > { %v4557_v51 = vrot.slane %v4553_v50, %v4520_v20 }
 0x1c2   : > { %1106 = vmatpush1.bf16.msra.mxu0 %v3808_v1  ;;  %3572 = vmatpush3.bf16.msra.mxu1 %v3821_v6 }
 0x1c3   : > { %1107 = vmatprep.subr.bf16.mxu0 %v3809_v2  ;;  %3573 = vmatprep.subr.bf16.mxu1 %v3822_v9 }
 0x1c6   : > { %1108 = vmatpush1.bf16.msra.mxu0 %v3811_v4  ;;  %3574 = vmatpush3.bf16.msra.mxu1 %v3822_v9 }
 0x1c7   : > { %1109 = vmatprep.subr.bf16.mxu0 %v3812_v5  ;;  %3575 = vmatprep.subr.bf16.mxu1 %v3823_v11 }
 0x1ca   : > { %1110 = vmatpush1.bf16.msra.mxu0 %v3814_v7  ;;  %3576 = vmatpush3.bf16.msra.mxu1 %v3823_v11 }
 0x1cb   : > { %1111 = vmatprep.subr.bf16.mxu0 %v3815_v8  ;;  %3577 = vmatprep.subr.bf16.mxu1 %v3824_v12 }
 0x1ce   : > { %1112 = vmatpush1.bf16.msra.mxu0 %v3817_v10  ;;  %3578 = vmatpush3.bf16.msra.mxu1 %v3824_v12  ;;  %v4568_v10 = vld [vmem:[%s4411_s21] sm:$0xff]  }
 0x1cf   : > { %3579 = vmatprep.subr.bf16.mxu1 %v3825_v13  ;;  %3591 = vmatprep.subr.bf16.mxu0 %v4149_v17 }
 0x1d1   : > { %1130 = vmatmul.mubr.bf16.vlgmr.msra.gmra.mrb[0].mxu0 %v918_v62 }
 0x1d2   : > { %1139 = vmatprep.mubr.bf16.mxu0 %v4148_v52  ;;  %3580 = vmatpush3.bf16.msra.mxu1 %v3825_v13 }
 0x1d3   : > { %3585 = vmatprep.subr.bf16.mxu1 %v4149_v17 }
 0x1d5   : > { %3582 = vmatmul.mubr.bf16.vlgmr.msra.gmra.mrb[0].mxu1 %v919_v16 }
 0x1d6   : > { %3587 = vmatprep.mubr.msk.bf16.mxu1 %vm4150_vm0, %v4149_v17 }
 0x1d9   : > { %1140 = vmatmul.mubr.bf16.gmra.mrb[4].mxu0 %v919_v16 }
 0x1da   : > { %3593 = vmatprep.mubr.msk.bf16.mxu0 %vm4150_vm0, %v4149_v17 }
 0x2a4   : > { %v1131_v24 = vpop.f32.mrb[0].mxu0 }
 0x2a5   : > { %v1132_v26 = vadd.f32 %v1131_v24, %v4527_v23  ;;  %v1133_v27 = vpop.f32.mrb[1].mxu0 }
 0x2a6   : > { %v1135_v28 = vpop.f32.mrb[2].mxu0  ;;  %v1134_v31 = vadd.f32 %v1133_v27, %v4530_v25 }
 0x2a7   : > { %v1136_v29 = vadd.f32 %v1135_v28, %v4527_v23  ;;  %v1137_v30 = vpop.f32.mrb[3].mxu0  ;;  %v1217_v33 = vmul.f32 0.125, %v1132_v26 }
 0x2a8   : > { %v1138_v32 = vadd.f32 %v1137_v30, %v4530_v25  ;;  %v3583_v40 = vpop.f32.mrb[0].mxu1  ;;  %v4583_v30 = vld [vmem:[%s4411_s21 + $0x10] sm:$0xff]  }
 0x2a9   : > { %v1218_v34 = vmul.f32 0.125, %v1136_v29  ;;  %v1193_v41 = vadd.f32 %v3583_v40, %v965_v39  ;;  %v1184_v42 = vpop.f32.mrb[1].mxu1 }
 0x2aa   : > { %v1220_v35 = vpack.c.bf16 %v1138_v32, %v1134_v31  ;;  %v1185_v43 = vadd.f32 %v1184_v42, %v965_v39  ;;  %v3584_v44 = vpop.f32.mrb[2].mxu1 }
 0x2ab   : > { %v1219_v36 = vpack.c.bf16 %v1218_v34, %v1217_v33  ;;  %v1196_v45 = vadd.f32 %v3584_v44, %v965_v39  ;;  %v1187_v46 = vpop.f32.mrb[3].mxu1 }
 0x2ac   : > { %v1231_v37 = vsel %vm1226_vm1, %v1220_v35, 0  ;;  %v1188_v47 = vadd.f32 %v1187_v46, %v965_v39  ;;  %v1141_v9 = vpop.f32.mrb[4].mxu0 }
 0x2ad   : > { %3586 = vmatpush3.bf16.xpose.msra.mxu1 %v1231_v37  ;;  %v4544_v48 = vpack.c.bf16 %v1196_v45, %v1193_v41  ;;  %v1142_v11 = vadd.f32 %v1141_v9, %v4527_v23  ;;  %v1143_v12 = vpop.f32.mrb[5].mxu0  ;;  %v4599_v41 = vld [vmem:[%s4411_s21 + $0x18] sm:$0xff]  }
 0x2ae   : > { %3597 = vmatprep.subr.bf16.mxu1 %v4149_v17  ;;  %v4546_v49 = vpack.c.bf16 %v1188_v47, %v1185_v43  ;;  %v1144_v13 = vadd.f32 %v1143_v12, %v4530_v25  ;;  %v1145_v16 = vpop.f32.mrb[6].mxu0 }
 0x2af   : > { %v1614_v21 = vmul.f32 0.125, %v1142_v11  ;;  %v1146_v24 = vadd.f32 %v1145_v16, %v4527_v23  ;;  %v1147_v26 = vpop.f32.mrb[7].mxu0  ;;  %v4628_v11 = vld [vmem:[%s4411_s21 + $0x30] sm:$0xff]  }
 0x2b0   : > { %3592 = vmatpush3.bf16.msra.mxu0 %v4546_v49  ;;  %v1148_v27 = vadd.f32 %v1147_v26, %v4530_v25 }
 0x2b1   : > { %3609 = vmatprep.subr.bf16.mxu0 %v4149_v17  ;;  %v1615_v28 = vmul.f32 0.125, %v1146_v24 }
 0x2b2   : > { %v4579_v29 = vpack.c.bf16 %v1148_v27, %v1144_v13 }
 0x2b3   : > { %v4585_v31 = vpack.c.bf16 %v1615_v28, %v1614_v21 }
 0x2b4   : > { %3588 = vmatmul.mubr.msk.bf16.vlgmr.msra.gmra.mrb[4].mxu1 %vm1226_vm1, %v1219_v36 }
 0x2b5   : > { %3605 = vmatprep.mubr.msk.bf16.mxu1 %vm4150_vm0, %v4149_v17  ;;  %3598 = vmatpush3.bf16.msra.mxu1 %v4568_v10 }
 0x2b6   : > { %3599 = vmatprep.subr.bf16.mxu1 %v4149_v17 }
 0x2b9   : > { %3600 = vmatpush3.bf16.msra.mxu1 %v4574_v18 }
 0x2ba   : > { %3601 = vmatprep.subr.bf16.mxu1 %v4149_v17 }
 0x2bd   : > { %3602 = vmatpush3.bf16.msra.mxu1 %v4583_v30 }
 0x2be   : > { %3603 = vmatprep.subr.bf16.mxu1 %v4149_v17 }
 0x2c1   : > { %3604 = vmatpush3.bf16.msra.mxu1 %v4599_v41 }
 0x2c2   : > { %3621 = vmatprep.subr.bf16.mxu1 %v4149_v17 }
 0x387   : > { %v1267_v53 = vpop.f32.mrb[4].mxu1 }
 0x388   : > { %v1268_v54 = vadd.f32 %v1267_v53, %v4557_v51  ;;  %v3589_v55 = vpop.f32.mrb[5].mxu1 }
 0x389   : > { %v1270_v56 = vpop.f32.mrb[6].mxu1 }
 0x38a   : > { %v1271_v57 = vadd.f32 %v1270_v56, %v4557_v51  ;;  %v3590_v58 = vpop.f32.mrb[7].mxu1  ;;  %v1275_v59 = vsel %vm1274_vm2, %v1268_v54, -inf }
 0x38b   : > { %1276 = vmax.xlane.f32.xlu0 %v1275_v59 }
 0x38c   : > { %v1278_v62 = vsel %vm1274_vm2, %v1271_v57, -inf }
 0x38f   : > { %1279 = vmax.xlane.f32.xlu0 %v1278_v62 }
 0x3a5   : > { %1423 = vrot.lane.b32.xlu0 %v1220_v35, %s4151_s0 }
 0x418   : > { %v1277_v63 = vpop.xlane.xlu0 %1276 }
 0x419   : > { %v1281_v0 = vsub.f32 %v1268_v54, %v1277_v63 }
 0x41b   : > { %v1283_v1 = vmul.f32 1.442695, %v1281_v0 }
 0x41c   : > { %v1280_v2 = vpop.xlane.xlu0 %1279 }
 0x41d   : > { %3914 = vpow2.f32 %v1283_v1  ;;  %v1282_v3 = vsub.f32 %v1271_v57, %v1280_v2 }
 0x41f   : > { %v1285_v4 = vmul.f32 1.442695, %v1282_v3 }
 0x421   : > { %3916 = vpow2.f32 %v1285_v4 }
 0x427   : > { %v3915_v5 = vpop.eup %3914 }
 0x428   : > { %v1287_v6 = vsel %vm1274_vm2, %v3915_v5, 0.0 }
 0x429   : > { %1288 = vadd.xlane.f32.xlu1 %v1287_v6 }
 0x42b   : > { %v3917_v7 = vpop.eup %3916 }
 0x42c   : > { %v1290_v8 = vsel %vm1274_vm2, %v3917_v7, 0.0 }
 0x42d   : > { %1291 = vadd.xlane.f32.xlu1 %v1290_v8  ;;  %v4621_v8 = vld [vmem:[%s4411_s21 + $0x28] sm:$0xff]  }
 0x43e   : > { %1420 = vrot.lane.b32.xlu1 %v1219_v36, %s4151_s0  ;;  %v1424_v36 = vpop.permute.xlu0 %1423 }
 0x43f   : > { %v1429_v39 = vsel %vm1226_vm1, %v1424_v36, 0 }
 0x4b6   : > { %v1289_v23 = vpop.xlane.xlu1 %1288 }
 0x4b7   : > { %3918 = vrcp.f32 %v1289_v23 }
 0x4ba   : > { %v1292_v32 = vpop.xlane.xlu1 %1291 }
 0x4bb   : > { %3920 = vrcp.f32 %v1292_v32 }
 0x4be   : > { %v1421_v40 = vpop.permute.xlu1 %1420 }
 0x4c1   : > { %v3919_v25 = vpop.eup %3918 }
 0x4c2   : > { %v1295_v34 = vmul.f32 %v3919_v25, %v3915_v5  ;;  %v1627_v25 = vsel %vm1226_vm1, %v4579_v29, 0 }
 0x4c5   : > { %v3921_v33 = vpop.eup %3920 }
 0x4c6   : > { %v1296_v35 = vmul.f32 %v3921_v33, %v3917_v7  ;;  %v4617_v7 = vld [vmem:[%s4411_s21 + $0x20] sm:$0xff]   ;;  %v4649_v33 = vld [vmem:[%s4411_s21 + $0x38] sm:$0xff]  }
 0x4c8   : > { %v1297_v37 = vpack.c.bf16 %v1296_v35, %v1295_v34 }
 0x4ca   : > { %3594 = vmatmul.mubr.msk.bf16.vlgmr.msra.gmra.mrb[8].mxu0 %vm1274_vm2, %v1297_v37 }
 0x4cb   : > { %3610 = vmatpush3.bf16.xpose.msra.mxu0 %v1429_v39  ;;  %3611 = vmatprep.mubr.msk.bf16.mxu0 %vm4150_vm0, %v4149_v17 }
 0x4cc   : > { %3615 = vmatprep.subr.bf16.mxu0 %v4149_v17 }
 0x4d2   : > { %3612 = vmatmul.mubr.msk.bf16.vlgmr.msra.gmra.mrb[12].mxu0 %vm1226_vm1, %v1421_v40 }
 0x4d3   : > { %3617 = vmatprep.mubr.msk.bf16.mxu0 %vm4150_vm0, %v4149_v17 }
 0x59d   : > { %v1335_v42 = vpop.f32.mrb[8].mxu0 }
 0x59e   : > { %v3595_v43 = vpop.f32.mrb[9].mxu0 }
 0x59f   : > { %v1338_v44 = vpop.f32.mrb[10].mxu0 }
 0x5a0   : > { %v1342_v45 = vpack.c.bf16 %v1338_v44, %v1335_v42  ;;  %v3596_v46 = vpop.f32.mrb[11].mxu0 }
 0x5a2   : > { %3606 = vmatmul.mubr.msk.bf16.vlgmr.msra.gmra.mrb[8].mxu1 %vm1226_vm1, %v1342_v45 }
 0x5a3   : > { %3629 = vmatprep.mubr.msk.bf16.mxu1 %vm4150_vm0, %v4149_v17  ;;  %3622 = vmatpush3.bf16.msra.mxu1 %v4617_v7 }
 0x5a4   : > { %3623 = vmatprep.subr.bf16.mxu1 %v4149_v17 }
 0x5a5   : > { %v1465_v47 = vpop.f32.mrb[12].mxu0 }
 0x5a6   : > { %v1466_v53 = vadd.f32 %v1465_v47, %v4557_v51  ;;  %v3613_v54 = vpop.f32.mrb[13].mxu0 }
 0x5a7   : > { %v1468_v55 = vpop.f32.mrb[14].mxu0  ;;  %3624 = vmatpush3.bf16.msra.mxu1 %v4621_v8 }
 0x5a8   : > { %v1469_v56 = vadd.f32 %v1468_v55, %v4557_v51  ;;  %v3614_v57 = vpop.f32.mrb[15].mxu0  ;;  %v1472_v58 = vsel %vm1274_vm2, %v1466_v53, -inf  ;;  %3625 = vmatprep.subr.bf16.mxu1 %v4149_v17 }
 0x5a9   : > { %1473 = vmax.xlane.f32.xlu1 %v1472_v58 }
 0x5aa   : > { %v1475_v59 = vsel %vm1274_vm2, %v1469_v56, -inf }
 0x5ab   : > { %1476 = vmax.xlane.f32.xlu0 %v1475_v59  ;;  %3626 = vmatpush3.bf16.msra.mxu1 %v4628_v11 }
 0x5ac   : > { %3627 = vmatprep.subr.bf16.mxu1 %v4149_v17 }
 0x5af   : > { %3628 = vmatpush3.bf16.msra.mxu1 %v4649_v33 }
 0x5b0   : > { %3645 = vmatprep.subr.bf16.mxu1 %v4149_v17 }
 0x636   : > { %v1474_v62 = vpop.xlane.xlu1 %1473 }
 0x637   : > { %v1478_v63 = vsub.f32 %v1466_v53, %v1474_v62 }
 0x638   : > { %v1477_v0 = vpop.xlane.xlu0 %1476 }
 0x639   : > { %v1480_v1 = vmul.f32 1.442695, %v1478_v63  ;;  %v1479_v2 = vsub.f32 %v1469_v56, %v1477_v0 }
 0x63b   : > { %3922 = vpow2.f32 %v1480_v1  ;;  %v1482_v3 = vmul.f32 1.442695, %v1479_v2 }
 0x63d   : > { %3924 = vpow2.f32 %v1482_v3 }
 0x645   : > { %v3923_v4 = vpop.eup %3922 }
 0x646   : > { %v1484_v51 = vsel %vm1274_vm2, %v3923_v4, 0.0 }
 0x647   : > { %v3925_v5 = vpop.eup %3924  ;;  %1485 = vadd.xlane.f32.xlu0 %v1484_v51 }
 0x648   : > { %v1487_v6 = vsel %vm1274_vm2, %v3925_v5, 0.0 }
 0x649   : > { %1488 = vadd.xlane.f32.xlu1 %v1487_v6 }
 0x65d   : > { %1496 = vrot.lane.b32.xlu0 %v4546_v49, %s4151_s0 }
 0x661   : > { %1785 = vrot.lane.b32.xlu0 %v4585_v31, %s4151_s0 }
 0x675   : > { %v4624_v9 = vpop.f32.mrb[8].mxu1 }
 0x676   : > { %v3607_v12 = vpop.f32.mrb[9].mxu1 }
 0x677   : > { %v4631_v49 = vpop.f32.mrb[10].mxu1 }
 0x678   : > { %v3608_v13 = vpop.f32.mrb[11].mxu1 }
 0x6d4   : > { %v1486_v16 = vpop.xlane.xlu0 %1485 }
 0x6d5   : > { %3926 = vrcp.f32 %v1486_v16 }
 0x6d6   : > { %v1489_v21 = vpop.xlane.xlu1 %1488 }
 0x6d7   : > { %3928 = vrcp.f32 %v1489_v21 }
 0x6d8   : > { %v1497_v24 = vpop.permute.xlu0 %1496 }
 0x6d9   : > { %3616 = vmatpush3.bf16.msra.mxu0 %v1497_v24 }
 0x6da   : > { %3633 = vmatprep.subr.bf16.mxu0 %v4149_v17 }
 0x6df   : > { %v3927_v26 = vpop.eup %3926 }
 0x6e0   : > { %v1492_v28 = vmul.f32 %v3927_v26, %v3923_v4 }
 0x6e1   : > { %v3929_v27 = vpop.eup %3928 }
 0x6e2   : > { %v1493_v23 = vmul.f32 %v3929_v27, %v3925_v5 }
 0x6e4   : > { %v1494_v32 = vpack.c.bf16 %v1493_v23, %v1492_v28 }
 0x6e6   : > { %3618 = vmatmul.mubr.msk.bf16.vlgmr.msra.gmra.mrb[16].mxu0 %vm1274_vm2, %v1494_v32 }
 0x6e7   : > { %3634 = vmatpush3.bf16.xpose.msra.mxu0 %v1627_v25  ;;  %3635 = vmatprep.mubr.msk.bf16.mxu0 %vm4150_vm0, %v4149_v17 }
 0x6e8   : > { %3639 = vmatprep.subr.bf16.mxu0 %v4149_v17 }
 0x6ee   : > { %3636 = vmatmul.mubr.msk.bf16.vlgmr.msra.gmra.mrb[20].mxu0 %vm1226_vm1, %v4585_v31  ;;  %v4656_v31 = vrot.slane %v4553_v50, %v4524_v22 }
 0x6ef   : > { %3640 = vmatpush3.bf16.msra.mxu0 %v4544_v48  ;;  %3641 = vmatprep.mubr.msk.bf16.mxu0 %vm4150_vm0, %v4149_v17 }
 0x6f0   : > { %3657 = vmatprep.subr.bf16.mxu0 %v4149_v17 }
 0x7b9   : > { %v1536_v34 = vpop.f32.mrb[16].mxu0 }
 0x7ba   : > { %v3619_v35 = vpop.f32.mrb[17].mxu0 }
 0x7bb   : > { %v1539_v36 = vpop.f32.mrb[18].mxu0 }
 0x7bc   : > { %v1543_v37 = vpack.c.bf16 %v1539_v36, %v1536_v34  ;;  %v3620_v39 = vpop.f32.mrb[19].mxu0 }
 0x7be   : > { %3630 = vmatmul.mubr.msk.bf16.vlgmr.msra.gmra.mrb[12].mxu1 %vm1226_vm1, %v1543_v37 }
 0x7bf   : > { %3646 = vmatpush3.bf16.msra.mxu1 %v4568_v10  ;;  %3653 = vmatprep.mubr.msk.bf16.mxu1 %vm4150_vm0, %v4149_v17 }
 0x7c0   : > { %3647 = vmatprep.subr.bf16.mxu1 %v4149_v17 }
 0x7c1   : > { %v1663_v40 = vpop.f32.mrb[20].mxu0 }
 0x7c2   : > { %v1664_v42 = vadd.f32 %v1663_v40, %v4656_v31  ;;  %v3637_v43 = vpop.f32.mrb[21].mxu0 }
 0x7c3   : > { %v1666_v44 = vpop.f32.mrb[22].mxu0  ;;  %3648 = vmatpush3.bf16.msra.mxu1 %v4574_v18 }
 0x7c4   : > { %v1667_v45 = vadd.f32 %v1666_v44, %v4656_v31  ;;  %v3638_v46 = vpop.f32.mrb[23].mxu0  ;;  %v1670_v50 = vsel %vm1274_vm2, %v1664_v42, -inf  ;;  %3649 = vmatprep.subr.bf16.mxu1 %v4149_v17 }
 0x7c5   : > { %1671 = vmax.xlane.f32.xlu1 %v1670_v50 }
 0x7c6   : > { %v1673_v10 = vsel %vm1274_vm2, %v1667_v45, -inf }
 0x7c7   : > { %3650 = vmatpush3.bf16.msra.mxu1 %v4583_v30 }
 0x7c8   : > { %3651 = vmatprep.subr.bf16.mxu1 %v4149_v17 }
 0x7c9   : > { %1674 = vmax.xlane.f32.xlu1 %v1673_v10 }
 0x7cb   : > { %3652 = vmatpush3.bf16.msra.mxu1 %v4599_v41  ;;  %v4681_v41 = vld [vmem:[%s5059_s16] ss:$0 sm:$0xff] }
 0x7cc   : > { %3669 = vmatprep.subr.bf16.mxu1 %v4149_v17  ;;  %v1417_v62 = vadd.f32 %v4681_v41, %v4624_v9  ;;  %v1418_v0 = vadd.f32 %v4681_v41, %v4631_v49  ;;  %v1786_v49 = vpop.permute.xlu0 %1785 }
 0x852   : > { %v1672_v18 = vpop.xlane.xlu1 %1671 }
 0x853   : > { %v1676_v47 = vsub.f32 %v1664_v42, %v1672_v18 }
 0x855   : > { %v1678_v53 = vmul.f32 1.442695, %v1676_v47 }
 0x856   : > { %v1675_v54 = vpop.xlane.xlu1 %1674 }
 0x857   : > { %3930 = vpow2.f32 %v1678_v53  ;;  %v1677_v55 = vsub.f32 %v1667_v45, %v1675_v54 }
 0x859   : > { %v1680_v56 = vmul.f32 1.442695, %v1677_v55 }
 0x85b   : > { %3932 = vpow2.f32 %v1680_v56 }
 0x861   : > { %v3931_v57 = vpop.eup %3930 }
 0x862   : > { %v1682_v30 = vsel %vm1274_vm2, %v3931_v57, 0.0 }
 0x863   : > { %1683 = vadd.xlane.f32.xlu1 %v1682_v30 }
 0x865   : > { %v3933_v58 = vpop.eup %3932 }
 0x866   : > { %v1685_v59 = vsel %vm1274_vm2, %v3933_v58, 0.0 }
 0x867   : > { %1686 = vadd.xlane.f32.xlu1 %v1685_v59 }
 0x878   : > { %1788 = vrot.lane.b32.xlu1 %v4579_v29, %s4151_s0 }
 0x891   : > { %v1605_v63 = vpop.f32.mrb[12].mxu1 }
 0x892   : > { %v1612_v1 = vadd.f32 %v1605_v63, %v1417_v62  ;;  %v3631_v2 = vpop.f32.mrb[13].mxu1 }
 0x893   : > { %v1608_v3 = vpop.f32.mrb[14].mxu1 }
 0x894   : > { %v1613_v4 = vadd.f32 %v1608_v3, %v1418_v0  ;;  %v3632_v51 = vpop.f32.mrb[15].mxu1  ;;  %v4709_v42 = vadd.f32 %v1612_v1, %v4483_v60 }
 0x8f0   : > { %v1684_v5 = vpop.xlane.xlu1 %1683 }
 0x8f1   : > { %3934 = vrcp.f32 %v1684_v5 }
 0x8f4   : > { %v1687_v29 = vpop.xlane.xlu1 %1686 }
 0x8f5   : > { %3936 = vrcp.f32 %v1687_v29  ;;  %v3834_v29 = vld [vmem:[%s4434_s6] ss:$16 sps:$4 sm:$0xff]  }
 0x8f8   : > { %v1789_v21 = vpop.permute.xlu1 %1788 }
 0x8f9   : > { %v1794_v9 = vsel %vm1226_vm1, %v1789_v21, 0 }
 0x8fb   : > { %v3935_v6 = vpop.eup %3934 }
 0x8fc   : > { %v1690_v13 = vmul.f32 %v3935_v6, %v3931_v57  ;;  %v3836_v6 = vld [vmem:[%s4434_s6 + $0x4] ss:$16 sps:$4 sm:$0xff]  }
 0x8ff   : > { %v3937_v12 = vpop.eup %3936 }
 0x900   : > { %v1691_v16 = vmul.f32 %v3937_v12, %v3933_v58  ;;  %v3837_v12 = vld [vmem:[%s4434_s6 + $0x8] ss:$16 sps:$4 sm:$0xff]  }
 0x902   : > { %v1692_v24 = vpack.c.bf16 %v1691_v16, %v1690_v13  ;;  %v3839_v13 = vld [vmem:[%s4434_s6 + $0xc] ss:$16 sps:$4 sm:$0xff]  }
 0x904   : > { %3642 = vmatmul.mubr.msk.bf16.vlgmr.msra.gmra.mrb[24].mxu0 %vm1274_vm2, %v1692_v24 }
 0x905   : > { %3658 = vmatpush3.bf16.xpose.msra.mxu0 %v1794_v9  ;;  %3659 = vmatprep.mubr.msk.bf16.mxu0 %vm4150_vm0, %v4149_v17 }
 0x906   : > { %3663 = vmatprep.subr.bf16.mxu0 %v4149_v17 }
 0x90c   : > { %3660 = vmatmul.mubr.msk.bf16.vlgmr.msra.gmra.mrb[28].mxu0 %vm1226_vm1, %v1786_v49 }
 0x90d   : > { %3665 = vmatprep.mubr.msk.bf16.mxu0 %vm4150_vm0, %v4149_v17 }
 0x9d7   : > { %v1730_v26 = vpop.f32.mrb[24].mxu0 }
 0x9d8   : > { %v3643_v27 = vpop.f32.mrb[25].mxu0 }
 0x9d9   : > { %v1733_v28 = vpop.f32.mrb[26].mxu0 }
 0x9da   : > { %v1737_v23 = vpack.c.bf16 %v1733_v28, %v1730_v26  ;;  %v3644_v32 = vpop.f32.mrb[27].mxu0 }
 0x9dc   : > { %3654 = vmatmul.mubr.msk.bf16.vlgmr.msra.gmra.mrb[16].mxu1 %vm1226_vm1, %v1737_v23 }
 0x9dd   : > { %3670 = vmatpush3.bf16.msra.mxu1 %v4617_v7  ;;  %3677 = vmatprep.mubr.msk.bf16.mxu1 %vm4150_vm0, %v4149_v17 }
 0x9de   : > { %3671 = vmatprep.subr.bf16.mxu1 %v4149_v17 }
 0x9df   : > { %v1830_v25 = vpop.f32.mrb[28].mxu0 }
 0x9e0   : > { %v1831_v34 = vadd.f32 %v1830_v25, %v4656_v31  ;;  %v3661_v35 = vpop.f32.mrb[29].mxu0 }
 0x9e1   : > { %v1833_v36 = vpop.f32.mrb[30].mxu0  ;;  %3672 = vmatpush3.bf16.msra.mxu1 %v4621_v8  ;;  %v1956_v8 = vadd.f32 %v1613_v4, %v4485_v61  ;;  %v3840_v35 = vld [vmem:[%s4434_s6 + $0x20] ss:$16 sps:$4 sm:$0xff]  }
 0x9e2   : > { %v1834_v37 = vadd.f32 %v1833_v36, %v4656_v31  ;;  %v3662_v39 = vpop.f32.mrb[31].mxu0  ;;  %v1837_v40 = vsel %vm1274_vm2, %v1831_v34, -inf  ;;  %3673 = vmatprep.subr.bf16.mxu1 %v4149_v17  ;;  %v3843_v36 = vld [vmem:[%s4434_s6 + $0x28] ss:$16 sps:$4 sm:$0xff]  }
 0x9e3   : > { %1838 = vmax.xlane.f32.xlu0 %v1837_v40  ;;  %v3848_v39 = vld [vmem:[%s4434_s6 + $0x44] ss:$16 sps:$4 sm:$0xff]   ;;  %v3849_v40 = vld [vmem:[%s4434_s6 + $0x48] ss:$16 sps:$4 sm:$0xff]  }
 0x9e4   : > { %v1840_v7 = vsel %vm1274_vm2, %v1834_v37, -inf }
 0x9e5   : > { %1841 = vmax.xlane.f32.xlu1 %v1840_v7  ;;  %3674 = vmatpush3.bf16.msra.mxu1 %v4628_v11  ;;  %v3851_v7 = vld [vmem:[%s4434_s6 + $0x4c] ss:$16 sps:$4 sm:$0xff]  }
 0x9e6   : > { %3675 = vmatprep.subr.bf16.mxu1 %v4149_v17 }
 0x9e9   : > { %1961 = vadd.xlane.f32.xlu1 %v4709_v42  ;;  %3676 = vmatpush3.bf16.msra.mxu1 %v4649_v33 }
 0x9ea   : > { %2295 = vmatprep.subr.bf16.mxu1 %v3839_v13  ;;  %v4789_v13 = vld [vmem:[%s5060_s22] ss:$0 sm:$0xff] }
 0x9ed   : > { %1963 = vadd.xlane.f32.xlu1 %v1956_v8 }
 0xa70   : > { %v1839_v31 = vpop.xlane.xlu0 %1838 }
 0xa71   : > { %v1843_v43 = vsub.f32 %v1831_v34, %v1839_v31  ;;  %v3852_v31 = vld [vmem:[%s4434_s6 + $0x60] ss:$16 sps:$4 sm:$0xff]  }
 0xa72   : > { %v1842_v44 = vpop.xlane.xlu1 %1841 }
 0xa73   : > { %v1845_v45 = vmul.f32 1.442695, %v1843_v43  ;;  %v1844_v46 = vsub.f32 %v1834_v37, %v1842_v44  ;;  %v3845_v37 = vld [vmem:[%s4434_s6 + $0x2c] ss:$16 sps:$4 sm:$0xff]   ;;  %v3855_v43 = vld [vmem:[%s4434_s6 + $0x68] ss:$16 sps:$4 sm:$0xff]  }
 0xa74   : > { %v3860_v44 = vld [vmem:[%s4434_s6 + $0x84] ss:$16 sps:$4 sm:$0xff]  }
 0xa75   : > { %3938 = vpow2.f32 %v1845_v45  ;;  %v1847_v50 = vmul.f32 1.442695, %v1844_v46  ;;  %v3863_v45 = vld [vmem:[%s4434_s6 + $0x8c] ss:$16 sps:$4 sm:$0xff]   ;;  %v3858_v46 = vld [vmem:[%s4434_s6 + $0x80] ss:$16 sps:$4 sm:$0xff]  }
 0xa76   : > { %v1962_v61 = vpop.xlane.xlu1 %1961 }
 0xa77   : > { %3940 = vpow2.f32 %v1847_v50  ;;  %v1970_v27 = vmul.f32 0.0078125, %v1962_v61  ;;  %v3861_v50 = vld [vmem:[%s4434_s6 + $0x88] ss:$16 sps:$4 sm:$0xff]   ;;  %v3872_v61 = vld [vmem:[%s4434_s6 + $0xc4] ss:$16 sps:$4 sm:$0xff]  }
 0xa79   : > { %v4737_v25 = vsub.f32 %v4709_v42, %v1970_v27  ;;  %v3854_v42 = vld [vmem:[%s4434_s6 + $0x64] ss:$16 sps:$4 sm:$0xff]  }
 0xa7a   : > { %v1964_v33 = vpop.xlane.xlu1 %1963 }
 0xa7b   : > { %v1971_v47 = vmul.f32 0.0078125, %v1964_v33  ;;  %v1978_v34 = vmul.f32 %v4737_v25, %v4737_v25  ;;  %v3875_v33 = vld [vmem:[%s4434_s6 + $0xcc] ss:$16 sps:$4 sm:$0xff]  }
 0xa7d   : > { %v4718_v56 = vsub.f32 %v1956_v8, %v1971_v47  ;;  %v3857_v8 = vld [vmem:[%s4434_s6 + $0x6c] ss:$16 sps:$4 sm:$0xff]   ;;  %v3873_v47 = vld [vmem:[%s4434_s6 + $0xc8] ss:$16 sps:$4 sm:$0xff]  }
 0xa7f   : > { %v3939_v11 = vpop.eup %3938  ;;  %v1979_v57 = vmul.f32 %v4718_v56, %v4718_v56 }
 0xa80   : > { %v1849_v17 = vsel %vm1274_vm2, %v3939_v11, 0.0 }
 0xa81   : > { %v3941_v60 = vpop.eup %3940  ;;  %1850 = vadd.xlane.f32.xlu0 %v1849_v17  ;;  %v3869_v17 = vld [vmem:[%s4434_s6 + $0xac] ss:$16 sps:$4 sm:$0xff]  }
 0xa82   : > { %v1852_v10 = vsel %vm1274_vm2, %v3941_v60, 0.0 }
 0xa85   : > { %1853 = vadd.xlane.f32.xlu0 %v1852_v10  ;;  %v3867_v10 = vld [vmem:[%s4434_s6 + $0xa8] ss:$16 sps:$4 sm:$0xff]  }
 0xa9b   : > { %1861 = vrot.lane.b32.xlu0 %v4544_v48, %s4151_s0 }
 0xaaf   : > { %v1775_v18 = vpop.f32.mrb[16].mxu1 }
 0xab0   : > { %v3655_v53 = vpop.f32.mrb[17].mxu1  ;;  %v1782_v16 = vadd.f32 %v4681_v41, %v1775_v18  ;;  %v3870_v18 = vld [vmem:[%s4434_s6 + $0xc0] ss:$16 sps:$4 sm:$0xff]  }
 0xab1   : > { %v1778_v54 = vpop.f32.mrb[18].mxu1  ;;  %v3878_v53 = vld [vmem:[%s4434_s6 + $0xe4] ss:$16 sps:$4 sm:$0xff]  }
 0xab2   : > { %v3656_v55 = vpop.f32.mrb[19].mxu1  ;;  %v1783_v24 = vadd.f32 %v4681_v41, %v1778_v54  ;;  %v3881_v54 = vld [vmem:[%s4434_s6 + $0xec] ss:$16 sps:$4 sm:$0xff]  }
 0xab3   : > { %v3876_v55 = vld [vmem:[%s4434_s6 + $0xe0] ss:$16 sps:$4 sm:$0xff]  }
 0xaba   : > { %1984 = vadd.xlane.f32.xlu0 %v1979_v57  ;;  %v3879_v57 = vld [vmem:[%s4434_s6 + $0xe8] ss:$16 sps:$4 sm:$0xff]  }
 0xb0e   : > { %v1851_v30 = vpop.xlane.xlu0 %1850 }
 0xb0f   : > { %3942 = vrcp.f32 %v1851_v30 }
 0xb12   : > { %v1854_v58 = vpop.xlane.xlu0 %1853 }
 0xb13   : > { %3944 = vrcp.f32 %v1854_v58 }
 0xb16   : > { %v1862_v59 = vpop.permute.xlu0 %1861 }
 0xb17   : > { %3664 = vmatpush3.bf16.msra.mxu0 %v1862_v59 }
 0xb18   : > { %2242 = vmatprep.subr.bf16.mxu0 %v3836_v6 }
 0xb19   : > { %v3943_v48 = vpop.eup %3942 }
 0xb1a   : > { %v1857_v63 = vmul.f32 %v3943_v48, %v3939_v11  ;;  %v3866_v11 = vld [vmem:[%s4434_s6 + $0xa4] ss:$16 sps:$4 sm:$0xff]  }
 0xb1d   : > { %v3945_v62 = vpop.eup %3944 }
 0xb1e   : > { %v1858_v0 = vmul.f32 %v3945_v62, %v3941_v60  ;;  %v3864_v60 = vld [vmem:[%s4434_s6 + $0xa0] ss:$16 sps:$4 sm:$0xff]  }
 0xb20   : > { %v1859_v1 = vpack.c.bf16 %v1858_v0, %v1857_v63 }
 0xb22   : > { %3666 = vmatmul.mubr.msk.bf16.vlgmr.msra.gmra.mrb[32].mxu0 %vm1274_vm2, %v1859_v1 }
 0xb23   : > { %2274 = vmatprep.mubr.bf16.mxu0 %v4148_v52  ;;  %2243 = vmatpush1.bf16.msra.mxu0 %v3834_v29 }
 0xb47   : > { %v1985_v30 = vpop.xlane.xlu0 %1984 }
 0xb48   : > { %v1991_v58 = vmul.f32 0.0078125, %v1985_v30 }
 0xb4a   : > { %v1995_v62 = vadd.f32 1e-12, %v1991_v58 }
 0xb4c   : > { %3946 = vrsqrt.f32 %v1995_v62 }
 0xb56   : > { %v3947_v6 = vpop.eup %3946 }
 0xbf5   : > { %v1901_v2 = vpop.f32.mrb[32].mxu0 }
 0xbf6   : > { %v3667_v3 = vpop.f32.mrb[33].mxu0 }
 0xbf7   : > { %v1904_v4 = vpop.f32.mrb[34].mxu0 }
 0xbf8   : > { %v1908_v51 = vpack.c.bf16 %v1904_v4, %v1901_v2  ;;  %v3668_v5 = vpop.f32.mrb[35].mxu0 }
 0xbfa   : > { %3678 = vmatmul.mubr.msk.bf16.vlgmr.msra.gmra.mrb[20].mxu1 %vm1226_vm1, %v1908_v51 }
 0xbfb   : > { %2327 = vmatprep.mubr.bf16.mxu1 %v4148_v52  ;;  %2296 = vmatpush1.bf16.msra.mxu1 %v3837_v12  ;;  %v2003_v12 = vmul.f32 %v3947_v6, %v4718_v56  ;;  %v4798_v56 = vld [vmem:[%s5061_s29] ss:$0 sm:$0xff] }
 0xbfc   : > { %2297 = vmatprep.subr.bf16.mxu1 %v3845_v37  ;;  %v3892_v37 = vld [vmem:[%s4396_s4 + $0x10] sm:$0xff]   ;;  %v2060_v6 = vld [vmem:[%s4440_s27] sm:$0xf] }
 0xbff   : > { %2298 = vmatpush1.bf16.msra.mxu1 %v3843_v36  ;;  %v3891_v36 = vld [vmem:[%s4396_s4 + $0xd0] sm:$0xff]  }
 0xc00   : > { %2299 = vmatprep.subr.bf16.mxu1 %v3851_v7  ;;  %v3896_v7 = vld [vmem:[%s4396_s4 + $0x18] sm:$0xff]  }
 0xc03   : > { %2300 = vmatpush1.bf16.msra.mxu1 %v3849_v40  ;;  %v3895_v40 = vld [vmem:[%s4396_s4 + $0xd8] sm:$0xff]  }
 0xc04   : > { %2301 = vmatprep.subr.bf16.mxu1 %v3857_v8  ;;  %v3898_v8 = vld [vmem:[%s4396_s4 + $0x60] sm:$0xff]  }
 0xc07   : > { %2302 = vmatpush1.bf16.msra.mxu1 %v3855_v43  ;;  %v3900_v43 = vld [vmem:[%s4396_s4 + $0x20] sm:$0xff]  }
 0xc08   : > { %2303 = vmatprep.subr.bf16.mxu1 %v3863_v45  ;;  %v3902_v45 = vld [vmem:[%s4396_s4 + $0x68] sm:$0xff]  }
 0xc0b   : > { %2304 = vmatpush1.bf16.msra.mxu1 %v3861_v50  ;;  %v3904_v50 = vld [vmem:[%s4396_s4 + $0x28] sm:$0xff]  }
 0xc0c   : > { %2305 = vmatprep.subr.bf16.mxu1 %v3869_v17  ;;  %v3906_v17 = vld [vmem:[%s4396_s4 + $0x70] sm:$0xff]  }
 0xc0f   : > { %2306 = vmatpush1.bf16.msra.mxu1 %v3867_v10  ;;  %v3908_v10 = vld [vmem:[%s4396_s4 + $0x30] sm:$0xff]  }
 0xc10   : > { %2307 = vmatprep.subr.bf16.mxu1 %v3875_v33  ;;  %v3910_v33 = vld [vmem:[%s4396_s4 + $0x78] sm:$0xff]  }
 0xc13   : > { %2308 = vmatpush1.bf16.msra.mxu1 %v3873_v47  ;;  %v3912_v47 = vld [vmem:[%s4396_s4 + $0x38] sm:$0xff]  }
 0xc14   : > { %2309 = vmatprep.subr.bf16.mxu1 %v3881_v54 }
 0xc17   : > { %2310 = vmatpush1.bf16.msra.mxu1 %v3879_v57 }
 0xccd   : > { %v1946_v21 = vpop.f32.mrb[20].mxu1 }
 0xcce   : > { %v1953_v9 = vadd.f32 %v1946_v21, %v1782_v16  ;;  %v3679_v49 = vpop.f32.mrb[21].mxu1 }
 0xccf   : > { %v1949_v26 = vpop.f32.mrb[22].mxu1 }
 0xcd0   : > { %v1954_v28 = vadd.f32 %v1949_v26, %v1783_v24  ;;  %v3680_v23 = vpop.f32.mrb[23].mxu1  ;;  %v4733_v32 = vadd.f32 %v1953_v9, %v4505_v14  ;;  %v3842_v14 = vld [vmem:[%s4434_s6 + $0x24] ss:$16 sps:$4 sm:$0xff]   ;;  %v2013_v24 = vmul.f32 %v4789_v13, %v2003_v12  ;;  %v4862_v12 = vrot.slane %v2060_v6, %v964_v38 }
 0xcd1   : > { %2244 = vmatprep.subr.bf16.mxu0 %v3842_v14  ;;  %v3883_v23 = vld [vmem:[%s4396_s4 + $0xc0] sm:$0xff]   ;;  %v3889_v14 = vld [vmem:[%s4396_s4 + $0x88] sm:$0xff]  }
 0xcd2   : > { %1965 = vadd.xlane.f32.xlu1 %v4733_v32  ;;  %v4740_v41 = vadd.f32 %v1954_v28, %v4507_v15  ;;  %2245 = vmatpush1.bf16.msra.mxu0 %v3840_v35  ;;  %v3846_v15 = vld [vmem:[%s4434_s6 + $0x40] ss:$16 sps:$4 sm:$0xff]   ;;  %v4805_v26 = vadd.f32 %v4798_v56, %v2013_v24  ;;  %v3888_v35 = vld [vmem:[%s4396_s4 + $0x8] sm:$0xff]  }
 0xcd3   : > { %2246 = vmatprep.subr.bf16.mxu0 %v3848_v39  ;;  %v3882_v28 = vld [vmem:[%s4396_s4 + $0x40] sm:$0xff]   ;;  %3519 = vmatprep.subr.bf16.mxu1 %v3883_v23  ;;  %v3894_v39 = vld [vmem:[%s4396_s4 + $0x58] sm:$0xff]  }
 0xcd6   : > { %1967 = vadd.xlane.f32.xlu1 %v4740_v41  ;;  %2247 = vmatpush1.bf16.msra.mxu0 %v3846_v15  ;;  %v3893_v15 = vld [vmem:[%s4396_s4 + $0x90] sm:$0xff]  }
 0xcd7   : > { %2248 = vmatprep.subr.bf16.mxu0 %v3854_v42  ;;  %v3897_v42 = vld [vmem:[%s4396_s4 + $0x98] sm:$0xff]  }
 0xcda   : > { %1982 = vadd.xlane.f32.xlu1 %v1978_v34  ;;  %2249 = vmatpush1.bf16.msra.mxu0 %v3852_v31  ;;  %v3887_v34 = vld [vmem:[%s4396_s4 + $0xc8] sm:$0xff]   ;;  %v3899_v31 = vld [vmem:[%s4396_s4 + $0xe0] sm:$0xff]  }
 0xcdb   : > { %2250 = vmatprep.subr.bf16.mxu0 %v3860_v44  ;;  %v3901_v44 = vld [vmem:[%s4396_s4 + $0xa0] sm:$0xff]  }
 0xcde   : > { %2251 = vmatpush1.bf16.msra.mxu0 %v3858_v46  ;;  %v3903_v46 = vld [vmem:[%s4396_s4 + $0xe8] sm:$0xff]  }
 0xcdf   : > { %2252 = vmatprep.subr.bf16.mxu0 %v3866_v11  ;;  %v3905_v11 = vld [vmem:[%s4396_s4 + $0xa8] sm:$0xff]  }
 0xce2   : > { %2253 = vmatpush1.bf16.msra.mxu0 %v3864_v60  ;;  %v3907_v60 = vld [vmem:[%s4396_s4 + $0xf0] sm:$0xff]  }
 0xce3   : > { %2254 = vmatprep.subr.bf16.mxu0 %v3872_v61  ;;  %v3909_v61 = vld [vmem:[%s4396_s4 + $0xb0] sm:$0xff]  }
 0xce6   : > { %2255 = vmatpush1.bf16.msra.mxu0 %v3870_v18  ;;  %v3911_v18 = vld [vmem:[%s4396_s4 + $0xf8] sm:$0xff]  }
 0xce7   : > { %2256 = vmatprep.subr.bf16.mxu0 %v3878_v53  ;;  %v3913_v53 = vld [vmem:[%s4396_s4 + $0xb8] sm:$0xff]  }
 0xcea   : > { %2257 = vmatpush1.bf16.msra.mxu0 %v3876_v55 }
 0xceb   : > { %3491 = vmatprep.subr.bf16.mxu0 %v3882_v28 }
 0xd5f   : > { %v1966_v59 = vpop.xlane.xlu1 %1965 }
 0xd60   : > { %v1972_v48 = vmul.f32 0.0078125, %v1966_v59 }
 0xd62   : > { %v4774_v63 = vsub.f32 %v4733_v32, %v1972_v48  ;;  %v3884_v32 = vld [vmem:[%s4396_s4] sm:$0xff]  }
 0xd63   : > { %v1968_v0 = vpop.xlane.xlu1 %1967 }
 0xd64   : > { %v1973_v1 = vmul.f32 0.0078125, %v1968_v0  ;;  %v1980_v2 = vmul.f32 %v4774_v63, %v4774_v63 }
 0xd66   : > { %v4779_v3 = vsub.f32 %v4740_v41, %v1973_v1  ;;  %1986 = vadd.xlane.f32.xlu1 %v1980_v2  ;;  %v3886_v41 = vld [vmem:[%s4396_s4 + $0x48] sm:$0xff]  }
 0xd67   : > { %v1983_v4 = vpop.xlane.xlu1 %1982 }
 0xd68   : > { %v1990_v51 = vmul.f32 0.0078125, %v1983_v4  ;;  %v1981_v5 = vmul.f32 %v4779_v3, %v4779_v3 }
 0xd6a   : > { %v1994_v29 = vadd.f32 1e-12, %v1990_v51  ;;  %1988 = vadd.xlane.f32.xlu1 %v1981_v5 }
 0xd6c   : > { %3948 = vrsqrt.f32 %v1994_v29 }
 0xd76   : > { %v3949_v16 = vpop.eup %3948 }
 0xd77   : > { %v2002_v21 = vmul.f32 %v3949_v16, %v4737_v25  ;;  %v3885_v25 = vld [vmem:[%s4396_s4 + $0x80] sm:$0xff]  }
 0xd79   : > { %v2012_v9 = vmul.f32 %v4789_v13, %v2002_v21 }
 0xd7b   : > { %v4802_v49 = vadd.f32 %v4798_v56, %v2012_v9 }
 0xd7d   : > { %v2026_v27 = vpack.c.bf16 %v4805_v26, %v4802_v49 }
 0xd7f   : > { %2275 = vmatmul.mubr.bf16.vlgmr.msra.gmra.mrb[36].mxu0 %v2026_v27  ;;  %2328 = vmatmul.mubr.bf16.vlgmr.msra.gmra.mrb[24].mxu1 %v2026_v27 }
 0xd80   : > { %2284 = vmatprep.mubr.bf16.mxu0 %v4148_v52  ;;  %2337 = vmatprep.mubr.bf16.mxu1 %v4148_v52  ;;  %v3890_v52 = vld [vmem:[%s4396_s4 + $0x50] sm:$0xff]  }
 0xd81   : > { %3492 = vmatpush3.bf16.msra.mxu0 %v3884_v32  ;;  %3520 = vmatpush3.bf16.msra.mxu1 %v3885_v25 }
 0xd82   : > { %3493 = vmatprep.subr.bf16.mxu0 %v3886_v41  ;;  %3521 = vmatprep.subr.bf16.mxu1 %v3887_v34 }
 0xd85   : > { %3494 = vmatpush3.bf16.msra.mxu0 %v3888_v35  ;;  %3522 = vmatpush3.bf16.msra.mxu1 %v3889_v14 }
 0xd86   : > { %3495 = vmatprep.subr.bf16.mxu0 %v3890_v52  ;;  %3523 = vmatprep.subr.bf16.mxu1 %v3891_v36 }
 0xd89   : > { %3496 = vmatpush3.bf16.msra.mxu0 %v3892_v37  ;;  %3524 = vmatpush3.bf16.msra.mxu1 %v3893_v15 }
 0xd8a   : > { %3497 = vmatprep.subr.bf16.mxu0 %v3894_v39  ;;  %3525 = vmatprep.subr.bf16.mxu1 %v3895_v40 }
 0xd8d   : > { %3498 = vmatpush3.bf16.msra.mxu0 %v3896_v7  ;;  %3526 = vmatpush3.bf16.msra.mxu1 %v3897_v42 }
 0xd8e   : > { %3499 = vmatprep.subr.bf16.mxu0 %v3898_v8  ;;  %3527 = vmatprep.subr.bf16.mxu1 %v3899_v31 }
 0xd91   : > { %3500 = vmatpush3.bf16.msra.mxu0 %v3900_v43  ;;  %3528 = vmatpush3.bf16.msra.mxu1 %v3901_v44 }
 0xd92   : > { %3501 = vmatprep.subr.bf16.mxu0 %v3902_v45  ;;  %3529 = vmatprep.subr.bf16.mxu1 %v3903_v46 }
 0xd95   : > { %3502 = vmatpush3.bf16.msra.mxu0 %v3904_v50  ;;  %3530 = vmatpush3.bf16.msra.mxu1 %v3905_v11 }
 0xd96   : > { %3503 = vmatprep.subr.bf16.mxu0 %v3906_v17  ;;  %3531 = vmatprep.subr.bf16.mxu1 %v3907_v60 }
 0xd99   : > { %3504 = vmatpush3.bf16.msra.mxu0 %v3908_v10  ;;  %3532 = vmatpush3.bf16.msra.mxu1 %v3909_v61 }
 0xd9a   : > { %3505 = vmatprep.subr.bf16.mxu0 %v3910_v33  ;;  %3533 = vmatprep.subr.bf16.mxu1 %v3911_v18 }
 0xd9d   : > { %3506 = vmatpush3.bf16.msra.mxu0 %v3912_v47  ;;  %3534 = vmatpush3.bf16.msra.mxu1 %v3913_v53 }
 0xdf3   : > { %v1987_v54 = vpop.xlane.xlu1 %1986 }
 0xdf4   : > { %v1992_v55 = vmul.f32 0.0078125, %v1987_v54 }
 0xdf6   : > { %v1996_v57 = vadd.f32 1e-12, %v1992_v55 }
 0xdf7   : > { %v1989_v30 = vpop.xlane.xlu1 %1988 }
 0xdf8   : > { %3950 = vrsqrt.f32 %v1996_v57  ;;  %v1993_v58 = vmul.f32 0.0078125, %v1989_v30 }
 0xdfa   : > { %v1997_v59 = vadd.f32 1e-12, %v1993_v58 }
 0xdfc   : > { %3952 = vrsqrt.f32 %v1997_v59 }
 0xe02   : > { %v3951_v48 = vpop.eup %3950 }
 0xe03   : > { %v2004_v62 = vmul.f32 %v3951_v48, %v4774_v63  ;;  %v2076_v63 = vsub.s32 3, %v4517_v19 }
 0xe05   : > { %v2014_v2 = vmul.f32 %v4789_v13, %v2004_v62  ;;  %v4867_v16 = vrot.slane %v2060_v6, %v2076_v63 }
 0xe06   : > { %v3953_v0 = vpop.eup %3952 }
 0xe07   : > { %v2005_v1 = vmul.f32 %v3953_v0, %v4779_v3  ;;  %v4848_v51 = vadd.f32 %v4798_v56, %v2014_v2  ;;  %v4858_v3 = vrot.slane %v2060_v6, %v4520_v20 }
 0xe09   : > { %v2015_v4 = vmul.f32 %v4789_v13, %v2005_v1  ;;  %v4865_v13 = vrot.slane %v2060_v6, %v4524_v22 }
 0xe0b   : > { %v4851_v5 = vadd.f32 %v4798_v56, %v2015_v4 }
 0xe0d   : > { %v2027_v29 = vpack.c.bf16 %v4851_v5, %v4848_v51 }
 0xe0f   : > { %2285 = vmatmul.mubr.bf16.gmra.mrb[40].mxu0 %v2027_v29  ;;  %2338 = vmatmul.mubr.bf16.gmra.mrb[28].mxu1 %v2027_v29 }
 0xe52   : > { %v2276_v21 = vpop.f32.mrb[36].mxu0  ;;  %v2329_v24 = vpop.f32.mrb[24].mxu1 }
 0xe53   : > { %v2277_v56 = vadd.f32 %v2276_v21, %v4858_v3  ;;  %v2330_v9 = vadd.f32 %v2329_v24, %v4862_v12  ;;  %v2278_v27 = vpop.f32.mrb[37].mxu0  ;;  %v2331_v28 = vpop.f32.mrb[25].mxu1 }
 0xe54   : > { %v2279_v20 = vadd.f32 %v2278_v27, %v4865_v13  ;;  %v2332_v23 = vadd.f32 %v2331_v28, %v4867_v16  ;;  %v2280_v19 = vpop.f32.mrb[38].mxu0  ;;  %v2333_v38 = vpop.f32.mrb[26].mxu1 }
 0xe55   : > { %v2364_v32 = vmul.f32 0.70710677, %v2277_v56  ;;  %v2366_v25 = vmul.f32 0.70710677, %v2330_v9  ;;  %v2281_v34 = vadd.f32 %v2280_v19, %v4858_v3  ;;  %v2334_v35 = vadd.f32 %v2333_v38, %v4862_v12  ;;  %v2282_v14 = vpop.f32.mrb[39].mxu0  ;;  %v2335_v52 = vpop.f32.mrb[27].mxu1 }
 0xe56   : > { %v2365_v22 = vmul.f32 0.70710677, %v2279_v20  ;;  %v2367_v41 = vmul.f32 0.70710677, %v2332_v23  ;;  %v2283_v36 = vadd.f32 %v2282_v14, %v4865_v13  ;;  %v2336_v37 = vadd.f32 %v2335_v52, %v4867_v16 }
 0xe57   : > { %3954 = verf.f32 %v2364_v32  ;;  %v2368_v15 = vmul.f32 0.70710677, %v2281_v34  ;;  %v2370_v39 = vmul.f32 0.70710677, %v2334_v35  ;;  %v2348_v46 = vmul.f32 0.5, %v2277_v56 }
 0xe58   : > { %3956 = verf.f32 %v2366_v25  ;;  %v2369_v40 = vmul.f32 0.70710677, %v2283_v36  ;;  %v2371_v7 = vmul.f32 0.70710677, %v2336_v37  ;;  %v2350_v50 = vmul.f32 0.5, %v2330_v9 }
 0xe59   : > { %3958 = verf.f32 %v2365_v22  ;;  %v2349_v60 = vmul.f32 0.5, %v2279_v20  ;;  %v2352_v61 = vmul.f32 0.5, %v2281_v34  ;;  %v2351_v47 = vmul.f32 0.5, %v2332_v23 }
 0xe5a   : > { %3960 = verf.f32 %v2367_v41  ;;  %v2354_v54 = vmul.f32 0.5, %v2334_v35  ;;  %v2353_v59 = vmul.f32 0.5, %v2283_v36  ;;  %v2355_v1 = vmul.f32 0.5, %v2336_v37 }
 0xe5b   : > { %3962 = verf.f32 %v2368_v15 }
 0xe5c   : > { %3964 = verf.f32 %v2370_v39 }
 0xe5d   : > { %3966 = verf.f32 %v2369_v40 }
 0xe5e   : > { %3968 = verf.f32 %v2371_v7 }
 0xe61   : > { %v3955_v42 = vpop.eup %3954 }
 0xe62   : > { %v3957_v8 = vpop.eup %3956  ;;  %v2396_v44 = vadd.f32 1.0, %v3955_v42 }
 0xe63   : > { %v3959_v31 = vpop.eup %3958  ;;  %v2398_v11 = vadd.f32 1.0, %v3957_v8 }
 0xe64   : > { %v3961_v43 = vpop.eup %3960  ;;  %v2397_v10 = vadd.f32 1.0, %v3959_v31  ;;  %v2412_v30 = vmul.f32 %v2396_v44, %v2348_v46 }
 0xe65   : > { %v3963_v45 = vpop.eup %3962  ;;  %v2399_v53 = vadd.f32 1.0, %v3961_v43  ;;  %v2414_v62 = vmul.f32 %v2398_v11, %v2350_v50 }
 0xe66   : > { %v3965_v17 = vpop.eup %3964  ;;  %v2400_v33 = vadd.f32 1.0, %v3963_v45  ;;  %v2413_v4 = vmul.f32 %v2397_v10, %v2349_v60 }
 0xe67   : > { %v3967_v18 = vpop.eup %3966  ;;  %v2402_v55 = vadd.f32 1.0, %v3965_v17  ;;  %v2415_v63 = vmul.f32 %v2399_v53, %v2351_v47 }
 0xe68   : > { %v3969_v57 = vpop.eup %3968  ;;  %v2416_v58 = vmul.f32 %v2400_v33, %v2352_v61  ;;  %v2401_v48 = vadd.f32 1.0, %v3967_v18 }
 0xe69   : > { %v2418_v0 = vmul.f32 %v2402_v55, %v2354_v54  ;;  %v2403_v2 = vadd.f32 1.0, %v3969_v57 }
 0xe6a   : > { %v2428_v29 = vpack.c.bf16 %v2416_v58, %v2412_v30  ;;  %v2417_v6 = vmul.f32 %v2401_v48, %v2353_v59 }
 0xe6b   : > { %v2430_v21 = vpack.c.bf16 %v2418_v0, %v2414_v62  ;;  %v2419_v24 = vmul.f32 %v2403_v2, %v2355_v1 }
 0xe6c   : > { %v2429_v56 = vpack.c.bf16 %v2417_v6, %v2413_v4 }
 0xe6d   : > { %v2431_v9 = vpack.c.bf16 %v2419_v24, %v2415_v63 }
 0xe6e   : > { %2731 = vmatprep.mubr.bf16.mxu0 %v2429_v56 }
 0xe6f   : > { %2780 = vmatprep.mubr.bf16.mxu1 %v2431_v9  ;;  %2732 = vmatmul.mubr.bf16.vlgmr.msra.gmra.mrb[44].mxu0 %v2428_v29 }
 0xe70   : > { %2781 = vmatmul.mubr.bf16.vlgmr.msra.gmra.mrb[32].mxu1 %v2430_v21 }
 0xee2   : > { %v2286_v27 = vpop.f32.mrb[40].mxu0  ;;  %v2339_v28 = vpop.f32.mrb[28].mxu1 }
 0xee3   : > { %v2287_v20 = vadd.f32 %v2286_v27, %v4858_v3  ;;  %v2340_v23 = vadd.f32 %v2339_v28, %v4862_v12  ;;  %v2288_v19 = vpop.f32.mrb[41].mxu0  ;;  %v2341_v38 = vpop.f32.mrb[29].mxu1 }
 0xee4   : > { %v2289_v32 = vadd.f32 %v2288_v19, %v4865_v13  ;;  %v2342_v25 = vadd.f32 %v2341_v38, %v4867_v16  ;;  %v2290_v22 = vpop.f32.mrb[42].mxu0  ;;  %v2343_v41 = vpop.f32.mrb[30].mxu1 }
 0xee5   : > { %v2372_v34 = vmul.f32 0.70710677, %v2287_v20  ;;  %v2374_v35 = vmul.f32 0.70710677, %v2340_v23  ;;  %v2291_v36 = vadd.f32 %v2290_v22, %v4858_v3  ;;  %v2344_v37 = vadd.f32 %v2343_v41, %v4862_v12  ;;  %v2292_v15 = vpop.f32.mrb[43].mxu0  ;;  %v2345_v39 = vpop.f32.mrb[31].mxu1 }
 0xee6   : > { %v2373_v14 = vmul.f32 0.70710677, %v2289_v32  ;;  %v2375_v52 = vmul.f32 0.70710677, %v2342_v25  ;;  %v2293_v40 = vadd.f32 %v2292_v15, %v4865_v13  ;;  %v2346_v7 = vadd.f32 %v2345_v39, %v4867_v16 }
 0xee7   : > { %3970 = verf.f32 %v2372_v34  ;;  %v2376_v42 = vmul.f32 0.70710677, %v2291_v36  ;;  %v2378_v8 = vmul.f32 0.70710677, %v2344_v37  ;;  %v2356_v11 = vmul.f32 0.5, %v2287_v20 }
 0xee8   : > { %3972 = verf.f32 %v2374_v35  ;;  %v2377_v31 = vmul.f32 0.70710677, %v2293_v40  ;;  %v2379_v43 = vmul.f32 0.70710677, %v2346_v7  ;;  %v2358_v13 = vmul.f32 0.5, %v2340_v23 }
 0xee9   : > { %3974 = verf.f32 %v2373_v14  ;;  %v2357_v60 = vmul.f32 0.5, %v2289_v32  ;;  %v2360_v61 = vmul.f32 0.5, %v2291_v36  ;;  %v2359_v47 = vmul.f32 0.5, %v2342_v25  ;;  %v3384_v20 = vld [vmem:[%s827_s20] ss:$0 sm:$0xff] }
 0xeea   : > { %3976 = verf.f32 %v2375_v52  ;;  %v2362_v54 = vmul.f32 0.5, %v2344_v37  ;;  %v2361_v59 = vmul.f32 0.5, %v2293_v40  ;;  %v2363_v1 = vmul.f32 0.5, %v2346_v7 }
 0xeeb   : > { %3978 = verf.f32 %v2376_v42 }
 0xeec   : > { %3980 = verf.f32 %v2378_v8 }
 0xeed   : > { %3982 = verf.f32 %v2377_v31 }
 0xeee   : > { %3984 = verf.f32 %v2379_v43 }
 0xef1   : > { %v3971_v3 = vpop.eup %3970 }
 0xef2   : > { %v3973_v44 = vpop.eup %3972  ;;  %v2404_v46 = vadd.f32 1.0, %v3971_v3 }
 0xef3   : > { %v3975_v12 = vpop.eup %3974  ;;  %v2406_v17 = vadd.f32 1.0, %v3973_v44 }
 0xef4   : > { %v3977_v45 = vpop.eup %3976  ;;  %v2405_v10 = vadd.f32 1.0, %v3975_v12  ;;  %v2420_v30 = vmul.f32 %v2404_v46, %v2356_v11 }
 0xef5   : > { %v3979_v50 = vpop.eup %3978  ;;  %v2407_v53 = vadd.f32 1.0, %v3977_v45  ;;  %v2422_v62 = vmul.f32 %v2406_v17, %v2358_v13 }
 0xef6   : > { %v3981_v16 = vpop.eup %3980  ;;  %v2408_v33 = vadd.f32 1.0, %v3979_v50  ;;  %v2421_v4 = vmul.f32 %v2405_v10, %v2357_v60 }
 0xef7   : > { %v3983_v18 = vpop.eup %3982  ;;  %v2410_v55 = vadd.f32 1.0, %v3981_v16  ;;  %v2423_v63 = vmul.f32 %v2407_v53, %v2359_v47 }
 0xef8   : > { %v3985_v57 = vpop.eup %3984  ;;  %v2424_v58 = vmul.f32 %v2408_v33, %v2360_v61  ;;  %v2409_v48 = vadd.f32 1.0, %v3983_v18 }
 0xef9   : > { %v2426_v0 = vmul.f32 %v2410_v55, %v2362_v54  ;;  %v2411_v2 = vadd.f32 1.0, %v3985_v57 }
 0xefa   : > { %v2425_v29 = vmul.f32 %v2409_v48, %v2361_v59  ;;  %v2432_v6 = vpack.c.bf16 %v2424_v58, %v2420_v30 }
 0xefb   : > { %v2427_v21 = vmul.f32 %v2411_v2, %v2363_v1  ;;  %v2434_v24 = vpack.c.bf16 %v2426_v0, %v2422_v62 }
 0xefc   : > { %v2433_v56 = vpack.c.bf16 %v2425_v29, %v2421_v4 }
 0xefd   : > { %v2435_v9 = vpack.c.bf16 %v2427_v21, %v2423_v63  ;;  %v3417_v21 = vld [vmem:[%s830_s12] ss:$0 sm:$0xff]  ;;  %s5065_s12 = sld [smem:[#allocation26_spill]] (!%p3419_p3) }
 0xefe   : > { %2739 = vmatprep.mubr.bf16.mxu0 %v2433_v56  ;;  %v3418_v56 = vld [vmem:[%s833_s17] ss:$0 sm:$0xff]  ;;  %s5062_s17 = sld [smem:[#allocation23_spill]] (!%p3419_p3) }
 0xeff   : > { %2788 = vmatprep.mubr.bf16.mxu1 %v2435_v9  ;;  %2740 = vmatmul.mubr.bf16.gmra.mrb[48].mxu0 %v2432_v6 }
 0xf00   : > { %2789 = vmatmul.mubr.bf16.gmra.mrb[36].mxu1 %v2434_v24 }
 0xf42   : > { %v3507_v27 = vpop.f32.mrb[44].mxu0 }
 0xf43   : > { %v3535_v28 = vpop.f32.mrb[32].mxu1  ;;  %v3508_v23 = vpop.f32.mrb[45].mxu0 }
 0xf44   : > { %v3509_v19 = vadd.f32 %v3508_v23, %v3507_v27  ;;  %v3536_v38 = vpop.f32.mrb[33].mxu1  ;;  %v3510_v32 = vpop.f32.mrb[46].mxu0 }
 0xf45   : > { %v3537_v25 = vadd.f32 %v3536_v38, %v3535_v28  ;;  %v3538_v22 = vpop.f32.mrb[34].mxu1  ;;  %v3511_v41 = vpop.f32.mrb[47].mxu0 }
 0xf46   : > { %v2734_v34 = vadd.f32 %v3509_v19, %v3384_v20  ;;  %v3512_v35 = vadd.f32 %v3511_v41, %v3510_v32  ;;  %v3539_v14 = vpop.f32.mrb[35].mxu1 }
 0xf47   : > { %v3540_v52 = vadd.f32 %v3539_v14, %v3538_v22 }
 0xf48   : > { %v2783_v36 = vadd.f32 %v3537_v25, %v2734_v34  ;;  %v2737_v37 = vadd.f32 %v3512_v35, %v3384_v20 }
 0xf4a   : > { %v2786_v15 = vadd.f32 %v3540_v52, %v2737_v37  ;;  %v2797_v39 = vadd.f32 %v2783_v36, %v4802_v49 }
 0xf4c   : > { %2803 = vadd.xlane.f32.xlu1 %v2797_v39  ;;  %v2798_v40 = vadd.f32 %v2786_v15, %v4805_v26 }
 0xf50   : > { %2805 = vadd.xlane.f32.xlu1 %v2798_v40 }
 0xfd2   : > { %v3513_v7 = vpop.f32.mrb[48].mxu0 }
 0xfd3   : > { %v3541_v42 = vpop.f32.mrb[36].mxu1  ;;  %v3514_v8 = vpop.f32.mrb[49].mxu0 }
 0xfd4   : > { %v3515_v31 = vadd.f32 %v3514_v8, %v3513_v7  ;;  %v3542_v43 = vpop.f32.mrb[37].mxu1  ;;  %v3516_v3 = vpop.f32.mrb[50].mxu0  ;;  %v3994_v7 = vld [vmem:[%s5062_s17] sm:$0xff] (!%p3419_p3)   ;;  %v3995_v8 = vld [vmem:[%s5062_s17 + $0x8] sm:$0xff] (!%p3419_p3)  }
 0xfd5   : > { %v3543_v44 = vadd.f32 %v3542_v43, %v3541_v42  ;;  %v3544_v12 = vpop.f32.mrb[38].mxu1  ;;  %v3517_v45 = vpop.f32.mrb[51].mxu0  ;;  %v4152_v42 = vmov (!%p3419_p3), 0.0   ;;  %v4002_v43 = vld [vmem:[%s5063_s3] sm:$0xff] (!%p3419_p3)  }
 0xfd6   : > { %v2742_v46 = vadd.f32 %v3515_v31, %v3384_v20  ;;  %v3518_v50 = vadd.f32 %v3517_v45, %v3516_v3  ;;  %v3545_v11 = vpop.f32.mrb[39].mxu1  ;;  %3681 = vmatprep.subr.bf16.mxu0 (!%p3419_p3), %v4152_v42  ;;  %3701 = vmatprep.subr.bf16.mxu1 (!%p3419_p3), %v4152_v42  ;;  %v3996_v31 = vld [vmem:[%s5062_s17 + $0x10] sm:$0xff] (!%p3419_p3)   ;;  %v3997_v3 = vld [vmem:[%s5062_s17 + $0x18] sm:$0xff] (!%p3419_p3)  }
 0xfd7   : > { %v3546_v13 = vadd.f32 %v3545_v11, %v3544_v12  ;;  %3682 = vmatpush3.bf16.msra.mxu0 (!%p3419_p3), %v3994_v7  ;;  %3697 = vmatprep.mubr.msk.bf16.mxu0 (!%p3419_p3), %vm4153_vm3, %v4152_v42  ;;  %v3998_v12 = vld [vmem:[%s5062_s17 + $0x20] sm:$0xff] (!%p3419_p3)   ;;  %v4004_v45 = vld [vmem:[%s5063_s3 + $0x10] sm:$0xff] (!%p3419_p3)  }
 0xfd8   : > { %v2791_v17 = vadd.f32 %v3543_v44, %v2742_v46  ;;  %v2745_v16 = vadd.f32 %v3518_v50, %v3384_v20  ;;  %3683 = vmatprep.subr.bf16.mxu0 (!%p3419_p3), %v4152_v42  ;;  %3717 = vmatprep.mubr.msk.bf16.mxu1 (!%p3419_p3), %vm4153_vm3, %v4152_v42  ;;  %v4003_v44 = vld [vmem:[%s5063_s3 + $0x8] sm:$0xff] (!%p3419_p3)   ;;  %v4005_v50 = vld [vmem:[%s5063_s3 + $0x18] sm:$0xff] (!%p3419_p3)   ;;  %v4000_v11 = vld [vmem:[%s5062_s17 + $0x30] sm:$0xff] (!%p3419_p3)  }
 0xfd9   : > { %v2804_v49 = vpop.xlane.xlu1 %2803  ;;  %3702 = vmatpush3.bf16.msra.mxu1 (!%p3419_p3), %v4002_v43  ;;  %v3999_v46 = vld [vmem:[%s5062_s17 + $0x28] sm:$0xff] (!%p3419_p3)  }
 0xfda   : > { %v2794_v60 = vadd.f32 %v3546_v13, %v2745_v16  ;;  %v2811_v10 = vmul.f32 0.0078125, %v2804_v49  ;;  %v2799_v26 = vadd.f32 %v2791_v17, %v4848_v51  ;;  %3703 = vmatprep.subr.bf16.mxu1 (!%p3419_p3), %v4152_v42  ;;  %v4001_v17 = vld [vmem:[%s5062_s17 + $0x38] sm:$0xff] (!%p3419_p3)  }
 0xfdb   : > { %3684 = vmatpush3.bf16.msra.mxu0 (!%p3419_p3), %v3995_v8 }
 0xfdc   : > { %2807 = vadd.xlane.f32.xlu1 %v2799_v26  ;;  %v2815_v33 = vsub.f32 %v2797_v39, %v2811_v10  ;;  %v2800_v47 = vadd.f32 %v2794_v60, %v4851_v5  ;;  %3685 = vmatprep.subr.bf16.mxu0 (!%p3419_p3), %v4152_v42  ;;  %v4006_v60 = vld [vmem:[%s5063_s3 + $0x20] sm:$0xff] (!%p3419_p3)   ;;  %v4007_v10 = vld [vmem:[%s5063_s3 + $0x28] sm:$0xff] (!%p3419_p3)  }
 0xfdd   : > { %v2806_v61 = vpop.xlane.xlu1 %2805  ;;  %3704 = vmatpush3.bf16.msra.mxu1 (!%p3419_p3), %v4003_v44 }
 0xfde   : > { %v2812_v18 = vmul.f32 0.0078125, %v2806_v61  ;;  %v2819_v54 = vmul.f32 %v2815_v33, %v2815_v33  ;;  %3705 = vmatprep.subr.bf16.mxu1 (!%p3419_p3), %v4152_v42  ;;  %v4009_v61 = vld [vmem:[%s5063_s3 + $0x38] sm:$0xff] (!%p3419_p3)  }
 0xfdf   : > { %3686 = vmatpush3.bf16.msra.mxu0 (!%p3419_p3), %v3996_v31 }
 0xfe0   : > { %2809 = vadd.xlane.f32.xlu1 %v2800_v47  ;;  %v2816_v53 = vsub.f32 %v2798_v40, %v2812_v18  ;;  %3687 = vmatprep.subr.bf16.mxu0 (!%p3419_p3), %v4152_v42 }
 0xfe1   : > { %3706 = vmatpush3.bf16.msra.mxu1 (!%p3419_p3), %v4004_v45 }
 0xfe2   : > { %v2820_v55 = vmul.f32 %v2816_v53, %v2816_v53  ;;  %3707 = vmatprep.subr.bf16.mxu1 (!%p3419_p3), %v4152_v42 }
 0xfe3   : > { %3688 = vmatpush3.bf16.msra.mxu0 (!%p3419_p3), %v3997_v3 }
 0xfe4   : > { %2823 = vadd.xlane.f32.xlu1 %v2819_v54  ;;  %3689 = vmatprep.subr.bf16.mxu0 (!%p3419_p3), %v4152_v42 }
 0xfe5   : > { %3708 = vmatpush3.bf16.msra.mxu1 (!%p3419_p3), %v4005_v50 }
 0xfe6   : > { %3709 = vmatprep.subr.bf16.mxu1 (!%p3419_p3), %v4152_v42 }
 0xfe7   : > { %3690 = vmatpush3.bf16.msra.mxu0 (!%p3419_p3), %v3998_v12 }
 0xfe8   : > { %2825 = vadd.xlane.f32.xlu1 %v2820_v55  ;;  %3691 = vmatprep.subr.bf16.mxu0 (!%p3419_p3), %v4152_v42 }
 0xfe9   : > { %3710 = vmatpush3.bf16.msra.mxu1 (!%p3419_p3), %v4006_v60 }
 0xfea   : > { %3711 = vmatprep.subr.bf16.mxu1 (!%p3419_p3), %v4152_v42 }
 0xfeb   : > { %3692 = vmatpush3.bf16.msra.mxu0 (!%p3419_p3), %v3999_v46 }
 0xfec   : > { %3693 = vmatprep.subr.bf16.mxu0 (!%p3419_p3), %v4152_v42 }
 0xfed   : > { %3712 = vmatpush3.bf16.msra.mxu1 (!%p3419_p3), %v4007_v10 }
 0xfee   : > { %3713 = vmatprep.subr.bf16.mxu1 (!%p3419_p3), %v4152_v42 }
 0xfef   : > { %3694 = vmatpush3.bf16.msra.mxu0 (!%p3419_p3), %v4000_v11 }
 0xff0   : > { %3695 = vmatprep.subr.bf16.mxu0 (!%p3419_p3), %v4152_v42 }
 0xff3   : > { %3696 = vmatpush3.bf16.msra.mxu0 (!%p3419_p3), %v4001_v17 }
0x1069   : > { %v2808_v57 = vpop.xlane.xlu1 %2807 }
0x106a   : > { %v2813_v30 = vmul.f32 0.0078125, %v2808_v57 }
0x106c   : > { %v2817_v58 = vsub.f32 %v2799_v26, %v2813_v30  ;;  %v4008_v26 = vld [vmem:[%s5063_s3 + $0x30] sm:$0xff] (!%p3419_p3)  }
0x106d   : > { %v2810_v59 = vpop.xlane.xlu1 %2809  ;;  %3714 = vmatpush3.bf16.msra.mxu1 (!%p3419_p3), %v4008_v26 }
0x106e   : > { %v2814_v48 = vmul.f32 0.0078125, %v2810_v59  ;;  %v2821_v62 = vmul.f32 %v2817_v58, %v2817_v58  ;;  %3715 = vmatprep.subr.bf16.mxu1 (!%p3419_p3), %v4152_v42 }
0x1070   : > { %v2818_v51 = vsub.f32 %v2800_v47, %v2814_v48  ;;  %2827 = vadd.xlane.f32.xlu0 %v2821_v62 }
0x1071   : > { %v2824_v0 = vpop.xlane.xlu1 %2823  ;;  %3716 = vmatpush3.bf16.msra.mxu1 (!%p3419_p3), %v4009_v61 }
0x1072   : > { %v2831_v1 = vmul.f32 0.0078125, %v2824_v0  ;;  %v2822_v2 = vmul.f32 %v2818_v51, %v2818_v51 }
0x1074   : > { %v2835_v5 = vadd.f32 1e-12, %v2831_v1  ;;  %2829 = vadd.xlane.f32.xlu1 %v2822_v2 }
0x1075   : > { %v2826_v4 = vpop.xlane.xlu1 %2825 }
0x1076   : > { %3986 = vrsqrt.f32 %v2835_v5  ;;  %v2832_v29 = vmul.f32 0.0078125, %v2826_v4 }
0x1078   : > { %v2836_v6 = vadd.f32 1e-12, %v2832_v29 }
0x107a   : > { %3988 = vrsqrt.f32 %v2836_v6 }
0x1080   : > { %v3987_v63 = vpop.eup %3986 }
0x1081   : > { %v2843_v24 = vmul.f32 %v3987_v63, %v2815_v33  ;;  %v3420_v33 = vld [vmem:[%s5064_s1] ss:$0 sm:$0xff] (!%p3419_p3) }
0x1083   : > { %v2853_v9 = vmul.f32 %v3417_v21, %v2843_v24 }
0x1084   : > { %v3989_v27 = vpop.eup %3988 }
0x1085   : > { %v4904_v28 = vadd.f32 %v3418_v56, %v2853_v9  ;;  %v2844_v20 = vmul.f32 %v3989_v27, %v2816_v53 }
0x1087   : > { %2867 = vst [vmem:[#allocation2] sm:$0xff] %v4904_v28  ;;  %v2854_v23 = vmul.f32 %v3417_v21, %v2844_v20 }
0x1089   : > { %v2864_v19 = vadd.f32 %v3418_v56, %v2854_v23 }
0x108b   : > { %2868 = vst [vmem:[#allocation2 + $0x8] sm:$0xff] %v2864_v19 }
0x10fd   : > { %v2828_v38 = vpop.xlane.xlu0 %2827 }
0x10fe   : > { %v2833_v32 = vmul.f32 0.0078125, %v2828_v38 }
0x1100   : > { %v2837_v25 = vadd.f32 1e-12, %v2833_v32 }
0x1101   : > { %v2830_v22 = vpop.xlane.xlu1 %2829 }
0x1102   : > { %3990 = vrsqrt.f32 %v2837_v25  ;;  %v2834_v41 = vmul.f32 0.0078125, %v2830_v22 }
0x1104   : > { %v2838_v34 = vadd.f32 1e-12, %v2834_v41 }
0x1106   : > { %3992 = vrsqrt.f32 %v2838_v34 }
0x110c   : > { %v3991_v35 = vpop.eup %3990 }
0x110d   : > { %v2845_v14 = vmul.f32 %v3991_v35, %v2817_v58  ;;  %v3429_v58 = vld [vmem:[%s5065_s12] ss:$0 sm:$0xff] (!%p3419_p3) }
0x110f   : > { %v2855_v52 = vmul.f32 %v3417_v21, %v2845_v14 }
0x1110   : > { %v3993_v36 = vpop.eup %3992 }
0x1111   : > { %v2865_v37 = vadd.f32 %v3418_v56, %v2855_v52  ;;  %v2846_v15 = vmul.f32 %v3993_v36, %v2818_v51  ;;  %2874 = sbr.rel (%p3419_p3) target bundleno = 4818 (0x12d2), region = 116 }
0x1113   : > { %2869 = vst [vmem:[#allocation2 + $0x10] sm:$0xff] %v2865_v37  ;;  %v2856_v39 = vmul.f32 %v3417_v21, %v2846_v15  ;;  %v2876_v13 = vrot.slane (!%p3419_p3), %v2865_v37, 7 }
0x1115   : > { %v2866_v40 = vadd.f32 %v3418_v56, %v2856_v39  ;;  %v2879_v16 = vsel (!%p3419_p3), %vm2878_vm4, %v4904_v28, %v2876_v13 }
0x1116   : > { %v2880_v49 = vpack.c.bf16 (!%p3419_p3), %v2879_v16, %v2879_v16 }
0x1117   : > { %2870 = vst [vmem:[#allocation2 + $0x18] sm:$0xff] %v2866_v40 }
0x1118   : > { %3698 = vmatmul.mubr.bf16.vlgmr.msra.gmra.mrb[0].mxu0 %v2880_v49 }
0x11eb   : > { %v2986_v18 = vpop.f32.mrb[0].mxu0 }
0x11ec   : > { %v2987_v47 = vadd.f32 %v3420_v33, %v2986_v18  ;;  %v3699_v53 = vpop.f32.mrb[1].mxu0 }
0x11ed   : > { %v2989_v54 = vpop.f32.mrb[2].mxu0 }
0x11ee   : > { %4010 = vtanh.f32 %v2987_v47  ;;  %v3700_v55 = vpop.f32.mrb[3].mxu0 }
0x11f8   : > { %v4011_v57 = vpop.eup %4010 }
0x11f9   : > { %v2993_v30 = vpack.c.bf16 %v4011_v57, %v4011_v57 }
0x11fb   : > { %3718 = vmatmul.mubr.bf16.vlgmr.msra.gmra.mrb[0].mxu1 %v2993_v30 }
0x12ce   : > { %v3099_v59 = vpop.f32.mrb[0].mxu1 }
0x12cf   : > { %v3100_v48 = vadd.f32 %v3429_v58, %v3099_v59  ;;  %v3719_v62 = vpop.f32.mrb[1].mxu1 }
0x12d0   : > { %v3102_v51 = vpop.f32.mrb[2].mxu1 }
0x12d1   : > { %3105 = vst [vmem:[#allocation8] sm:$0x3] %v3100_v48  ;;  %v3720_v0 = vpop.f32.mrb[3].mxu1 }
0x12d2 PF: > { %p3741_p6 = scmp.eq.s32.totalorder %s4279_s2, 1  ;;  %s4154_s24 = smov [#allocation8]  }
0x12d3   : > { %s3113_s0 = sshll.u32 %s4154_s24, 4  ;;  %s3114_s0 = int_to_ptr.vmem [resolvable:$true] %s3113_s0 }
0x12d4   : > { %s4072_s21 = scalar_lea.vmem %s3114_s0, 32  ;;  %p4079_p9 = scmp.lt.s32.totalorder %s3114_s0, %s3114_s0 }
0x12d5   : > { %p4073_p1 = scmp.ne.s32.totalorder %s3114_s0, %s4072_s21  ;;  %p4080_p4 = scmp.lt.s32.totalorder %s4072_s21, %s4072_s21 }
0x12d7   : > { %p4074_p2 = pnand %p4073_p1, %p3741_p6  ;;  %p4081_p5 = por %p4080_p4, %p4079_p9 }
0x12d9   : > { %p4075_p13 = pneg %p4074_p2 }
0x12db   : > { %p4082_p10 = pnand %p4081_p5, %p4075_p13 }
0x12dd   : > { %4085 = shalt.err (!%p4082_p10)
}
0x12de   : > { %s5066_s6 = sld [smem:[#allocation27_spill]] }
0x12e4   : > { %s4086_s22 = scalar_lea.hbm %s5066_s6, 32 }
0x12e5   : > { %p4087_p12 = scmp.ne.s32.totalorder %s5066_s6, %s4086_s22  ;;  %p4092_p8 = scmp.lt.u32.totalorder %s4086_s22, %s5066_s6 }
0x12e7   : > { %p4088_p0 = pnand %p4087_p12, %p3741_p6 }
0x12e9   : > { %p4089_p7 = pneg %p4088_p0 }
0x12eb   : > { %p4094_p11 = pnand %p4092_p8, %p4089_p7 }
0x12ed   : > { %4097 = shalt.err (!%p4094_p11)
}
0x12ee   : > { %3730 = dma.vmem_to_hbm [thread:$0]  (%p3741_p6), %s3114_s0, 32, %s5066_s6, [#allocation5]  }
0x12ef   : > { %4123 = dma.done.wait (%p3741_p6), [#allocation5], 32  }
0x12f0   : > { %4125 = vsyncadd (%p3741_p6), [#allocation5], 4294967264 }
0x12f1 PF: > { %s5067_s24 = sld [smem:[#allocation14_spill]]  ;;  %s5068_s1 = sld [smem:[#allocation12_spill]] }
0x12f2   : > { %s5069_s22 = sld [smem:[#allocation13_spill]]  ;;  %s5070_s23 = sld [smem:[#allocation15_spill]] }
0x12f7   : > { %p34_p3 = scmp.ge.s32.totalorder %s5067_s24, 4  }
0x12f9   :  { %36 = sbr.rel (!%p34_p3) target bundleno = 19 (0x13), region = 188 }
0x1300   :  { %3126 = vsyncpa [#allocation4], 1 }
0x1301   :  { %3128 = vsyncpa [#allocation4 + $0x1], 1 }
0x1302   :  { %3129 = vsyncpa [#allocation7], 1 }
0x1303   :  { %3131 = vsyncpa [#allocation7 + $0x1], 1 }
0x1304   :  { %3132 = vsyncpa [#allocation5], 1 }
0x1305   :  { %3134 = vsyncpa [#allocation5 + $0x1], 1 }

</bundles_post_ra>
